<compile_context>
chip_gen: v7x
topology: tpu7x:2x2x1
jax: 0.10.0
libtpu: 0.0.40
codegen_flags: <defaults>
</compile_context>

<pallas_src>
import math

import jax
import jax.numpy as jnp
from jax.experimental import pallas as pl
from jax.experimental.pallas import tpu as pltpu


def _gelu_tanh(x):
    # nn.GELU(approximate="tanh") -- the usual act_layer for this projection.
    c = 0.7978845608028654  # sqrt(2/pi)
    return 0.5 * x * (1.0 + jnp.tanh(c * (x + 0.044715 * x * x * x)))


# ---------------------------------------------------------------------------
# Kernels
# ---------------------------------------------------------------------------

def _mlp_fused_kernel(x_ref, w1_ref, b1_ref, w2_ref, b2_ref, o_ref):
    """Both layers in one shot (W2 fully resident). The GELU hidden state stays
    in registers -- no (tm, H) VMEM store/reload."""
    x = x_ref[...].astype(w1_ref.dtype)                       # bf16 MXU feed
    h = jnp.dot(x, w1_ref[...], preferred_element_type=jnp.float32)
    h = _gelu_tanh(h + b1_ref[...])                           # f32 epilogue
    y = jnp.dot(h.astype(w2_ref.dtype), w2_ref[...],
                preferred_element_type=jnp.float32)
    o_ref[...] = (y + b2_ref[...]).astype(o_ref.dtype)


def _mlp_tiled_kernel(x_ref, w1_ref, b1_ref, w2_ref, b2_ref, o_ref, h_ref):
    """W2 column-tiled along the innermost ('arbitrary') grid axis. linear_1 +
    GELU runs once per M tile (j == 0) and is cached in a bf16 VMEM scratch, so
    each j > 0 step only streams one lane-dense W2 column tile."""
    j = pl.program_id(1)

    @pl.when(j == 0)
    def _():
        x = x_ref[...].astype(w1_ref.dtype)                    # bf16 MXU feed
        h = jnp.dot(x, w1_ref[...], preferred_element_type=jnp.float32)
        h_ref[...] = _gelu_tanh(h + b1_ref[...]).astype(h_ref.dtype)

    y = jnp.dot(h_ref[...], w2_ref[...], preferred_element_type=jnp.float32)
    o_ref[...] = (y + b2_ref[...]).astype(o_ref.dtype)


# ---------------------------------------------------------------------------
# Tile planning
# ---------------------------------------------------------------------------

def _round_up(x, m):
    return ((x + m - 1) // m) * m


def _vmem_capacity_bytes():
    # Generation-aware: 128 MiB on v5e/v6e, 64 MiB (per TC) on v7x.
    try:
        return int(pltpu.get_tpu_info().vmem_capacity_bytes)
    except Exception:
        # Device query unavailable (e.g. AOT / CPU trace): assume the smallest
        # current generation (v7x, 64 MiB) so the plan is always safe.
        return 64 * 1024 * 1024


def _plan_vmem_bytes(tm, tn, C, H, x_bytes, w_bytes, out_bytes, tiled):
    """Worst-case VMEM for one plan: BlockSpec buffers (double-buffered),
    optional bf16 hidden-state scratch, and the compiler's f32 temporaries."""
    bias_bytes = 4  # biases are carried in f32
    total = 2 * tm * C * x_bytes                              # x tile
    total += 2 * C * H * w_bytes + 2 * H * bias_bytes         # W1 + b1
    total += 2 * H * tn * w_bytes + 2 * tn * bias_bytes       # W2 tile + b2 tile
    total += 2 * tm * tn * out_bytes                          # output tile
    if tiled:
        total += tm * H * 2                                   # bf16 hidden cache
    # Compiler temporaries: bf16 x cast, f32 linear_1 / GELU intermediates,
    # f32 linear_2 result before the output cast.
    total += tm * C * 2 + 3 * tm * H * 4 + tm * tn * 4
    return total


def _choose_tiles(M, C, H, x_bytes, w_bytes, out_bytes, vmem_budget):
    """Returns (tm, tn, tiled, m_tiles, n_tiles). Prefers a fully resident W2
    (tiled=False) and the largest tm that fits the VMEM budget."""
    m_cap = _round_up(min(max(M, 8), 1024), 8)
    tm_candidates = [t for t in
                     (1024, 768, 512, 384, 256, 192, 128, 96, 64, 48, 32, 16, 8)
                     if t <= m_cap] or [8]
    tn_options = [(H, False)] + [(t, True) for t in (512, 384, 256, 128)
                                 if H % t == 0 and t < H]

    for tn, tiled in tn_options:
        for tm in tm_candidates:
            if _plan_vmem_bytes(tm, tn, C, H, x_bytes, w_bytes,
                                out_bytes, tiled) <= vmem_budget:
                # Balance the M axis and keep >= 2 tiles so the "parallel" axis
                # can be sharded across v7x's two TensorCores.
                m_tiles = pl.cdiv(M, tm)
                if M > 8:
                    m_tiles = max(m_tiles, 2)
                tm = max(8, _round_up(pl.cdiv(M, m_tiles), 8))
                m_tiles = pl.cdiv(M, tm)
                n_tiles = (H // tn) if tiled else 1
                return tm, tn, tiled, m_tiles, n_tiles

    # TODO(synk): for very large C/H that do not fit even at tm=8 (e.g. f32
    # 4096x4096 weights on v7x), K-tile W1 over C with pltpu.emit_pipeline
    # instead of holding it resident.
    tn, tiled = ((128, True) if (H % 128 == 0 and H > 128) else (H, False))
    tm = 8
    return tm, tn, tiled, pl.cdiv(M, tm), (H // tn if tiled else 1)


# ---------------------------------------------------------------------------
# Wrapper
# ---------------------------------------------------------------------------

def text_projection(caption, w1, b1, w2, b2, *, mxu_dtype=jnp.bfloat16):
    """caption: [B, S, C]; w1: [C, H]; b1: [H]; w2: [H, H]; b2: [H] -> [B, S, H]."""
    B, S, C = caption.shape
    H = w1.shape[1]
    assert w1.shape == (C, H) and w2.shape == (H, H)
    assert b1.shape == (H,) and b2.shape == (H,)

    M = B * S
    out_dtype = caption.dtype

    # bf16 weight feed: one-time cast in the wrapper halves W1/W2 HBM traffic
    # and VMEM residency; accumulation stays f32 inside the kernel.
    w1c = w1.astype(mxu_dtype)
    w2c = w2.astype(mxu_dtype)
    b1_2d = b1.astype(jnp.float32).reshape(1, H)
    b2_2d = b2.astype(jnp.float32).reshape(1, H)
    x2d = caption.reshape(M, C)                 # view-like reshape, no pad/copy

    x_bytes = jnp.dtype(caption.dtype).itemsize
    w_bytes = jnp.dtype(mxu_dtype).itemsize
    out_bytes = jnp.dtype(out_dtype).itemsize

    vmem_budget = int(_vmem_capacity_bytes() * 0.8)   # ~102 MiB v5e/v6e, ~51 MiB v7x
    tm, tn, tiled, m_tiles, n_tiles = _choose_tiles(
        M, C, H, x_bytes, w_bytes, out_bytes, vmem_budget)

    # Advisory cost estimate reflecting the *actual* streamed traffic (W2 is
    # re-streamed once per M tile when column-tiled).
    w2_streams = m_tiles if n_tiles > 1 else 1
    cost = pl.CostEstimate(
        flops=2 * M * C * H + 2 * M * H * H,
        transcendentals=M * H,
        bytes_accessed=int(M * C * x_bytes
                           + C * H * w_bytes + H * 4
                           + w2_streams * H * H * w_bytes + H * 4
                           + M * H * out_bytes),
    )
    compiler_params = pltpu.CompilerParams(
        dimension_semantics=("parallel",) if not tiled else ("parallel", "arbitrary"),
        vmem_limit_bytes=vmem_budget,
    )

    if not tiled:
        grid_spec = pltpu.PrefetchScalarGridSpec(
            num_scalar_prefetch=0,
            grid=(m_tiles,),
            in_specs=[
                pl.BlockSpec((tm, C), lambda i: (i, 0)),   # x tile
                pl.BlockSpec((C, H), lambda i: (0, 0)),    # W1 (grid-invariant)
                pl.BlockSpec((1, H), lambda i: (0, 0)),    # b1
                pl.BlockSpec((H, H), lambda i: (0, 0)),    # W2 (grid-invariant)
                pl.BlockSpec((1, H), lambda i: (0, 0)),    # b2
            ],
            out_specs=pl.BlockSpec((tm, H), lambda i: (i, 0)),
        )
        kernel = _mlp_fused_kernel
    else:
        grid_spec = pltpu.PrefetchScalarGridSpec(
            num_scalar_prefetch=0,
            grid=(m_tiles, n_tiles),
            in_specs=[
                pl.BlockSpec((tm, C), lambda i, j: (i, 0)),    # x tile
                pl.BlockSpec((C, H), lambda i, j: (0, 0)),     # W1 (grid-invariant)
                pl.BlockSpec((1, H), lambda i, j: (0, 0)),     # b1
                pl.BlockSpec((H, tn), lambda i, j: (0, j)),    # W2 column tile
                pl.BlockSpec((1, tn), lambda i, j: (0, j)),    # b2 column tile
            ],
            out_specs=pl.BlockSpec((tm, tn), lambda i, j: (i, j)),
            scratch_shapes=[pltpu.VMEM((tm, H), jnp.bfloat16)],   # cached GELU(h)
        )
        kernel = _mlp_tiled_kernel

    out2d = pl.pallas_call(
        kernel,
        out_shape=jax.ShapeDtypeStruct((M, H), out_dtype),
        grid_spec=grid_spec,
        compiler_params=compiler_params,
        cost_estimate=cost,
    )(x2d, w1c, b1_2d, w2c, b2_2d)

    return out2d.reshape(B, S, H)


def init_params(key, in_channels, hidden_size, dtype=jnp.float32):
    """PyTorch-style uniform init; weights stored [in, out] (pre-transposed)."""
    k1, k2, k3, k4 = jax.random.split(key, 4)
    bound1 = 1.0 / math.sqrt(in_channels)
    bound2 = 1.0 / math.sqrt(hidden_size)
    w1 = jax.random.uniform(k1, (in_channels, hidden_size), dtype, -bound1, bound1)
    b1 = jax.random.uniform(k2, (hidden_size,), dtype, -bound1, bound1)
    w2 = jax.random.uniform(k3, (hidden_size, hidden_size), dtype, -bound2, bound2)
    b2 = jax.random.uniform(k4, (hidden_size,), dtype, -bound2, bound2)
    return w1, b1, w2, b2


if __name__ == "__main__":
    # Small but representative shapes: lane-dense H and a token count
    # (M = B*S = 600) that exercises the masked ragged final M tile.
    B, S, C, H = 2, 300, 256, 128
    key = jax.random.PRNGKey(0)
    k_x, k_p = jax.random.split(key)

    caption = jax.random.normal(k_x, (B, S, C), jnp.float32)
    w1, b1, w2, b2 = init_params(k_p, C, H, jnp.float32)

    out = jax.block_until_ready(text_projection(caption, w1, b1, w2, b2))

    # Plain-JAX f32 reference; the kernel feeds the MXU bf16 with f32
    # accumulation, hence the relaxed tolerance.
    ref = _gelu_tanh(caption @ w1 + b1) @ w2 + b2
    assert out.shape == (B, S, H)
    assert jnp.allclose(out, ref, atol=2e-2, rtol=2e-2), "mismatch vs reference"

    print("KERNEL_OK")
</pallas_src>

<mosaic_0001>
module attributes {stable_mosaic.version = 11 : i64} {
  func.func @_mlp_fused_kernel(%arg0: i32, %arg1: memref<304x256xf32, #tpu.memory_space<vmem>>, %arg2: memref<256x128xbf16, #tpu.memory_space<vmem>>, %arg3: memref<1x128xf32, #tpu.memory_space<vmem>>, %arg4: memref<128x128xbf16, #tpu.memory_space<vmem>>, %arg5: memref<1x128xf32, #tpu.memory_space<vmem>>, %arg6: memref<304x128xf32, #tpu.memory_space<vmem>>) attributes {dimension_semantics = [#tpu.dimension_semantics<parallel>], iteration_bounds = array<i64: 2>, scalar_prefetch = 0 : i64, scratch_operands = 0 : i64, tpu.core_type = #tpu.core_type<tc>, window_params = [{transform_indices = @transform_0, window_bounds = array<i64: 304, 256>}, {pipeline_mode = #tpu.pipeline_mode<synchronous>, transform_indices = @transform_1, window_bounds = array<i64: 256, 128>}, {pipeline_mode = #tpu.pipeline_mode<synchronous>, transform_indices = @transform_2, window_bounds = array<i64: 1, 128>}, {pipeline_mode = #tpu.pipeline_mode<synchronous>, transform_indices = @transform_3, window_bounds = array<i64: 128, 128>}, {pipeline_mode = #tpu.pipeline_mode<synchronous>, transform_indices = @transform_4, window_bounds = array<i64: 1, 128>}, {transform_indices = @transform_5, window_bounds = array<i64: 304, 128>}]} {
    %c0 = arith.constant 0 : index
    %c0_0 = arith.constant 0 : index
    %0 = vector.load %arg1[%c0, %c0_0] : memref<304x256xf32, #tpu.memory_space<vmem>>, vector<304x256xf32>
    %1 = arith.truncf %0 : vector<304x256xf32> to vector<304x256xbf16>
    %c0_1 = arith.constant 0 : index
    %c0_2 = arith.constant 0 : index
    %2 = vector.load %arg2[%c0_1, %c0_2] : memref<256x128xbf16, #tpu.memory_space<vmem>>, vector<256x128xbf16>
    %cst = arith.constant dense<0.000000e+00> : vector<304x128xf32>
    %3 = tpu.matmul %1, %2, %cst {dimension_numbers = #tpu.dot_dimension_numbers<[1], [0], [0], [1], [0, 0, 1, 1], [], []>} : vector<304x256xbf16>, vector<256x128xbf16>, vector<304x128xf32> -> vector<304x128xf32>
    %c0_3 = arith.constant 0 : index
    %c0_4 = arith.constant 0 : index
    %4 = vector.load %arg3[%c0_3, %c0_4] : memref<1x128xf32, #tpu.memory_space<vmem>>, vector<1x128xf32>
    %5 = vector.broadcast %4 : vector<1x128xf32> to vector<304x128xf32>
    %6 = arith.addf %3, %5 : vector<304x128xf32>
    %cst_5 = arith.constant 5.000000e-01 : f32
    %7 = vector.broadcast %cst_5 : f32 to vector<304x128xf32>
    %8 = arith.mulf %7, %6 : vector<304x128xf32>
    %cst_6 = arith.constant 4.471500e-02 : f32
    %9 = vector.broadcast %cst_6 : f32 to vector<304x128xf32>
    %10 = arith.mulf %9, %6 : vector<304x128xf32>
    %11 = arith.mulf %10, %6 : vector<304x128xf32>
    %12 = arith.mulf %11, %6 : vector<304x128xf32>
    %13 = arith.addf %6, %12 : vector<304x128xf32>
    %cst_7 = arith.constant 0.797884583 : f32
    %14 = vector.broadcast %cst_7 : f32 to vector<304x128xf32>
    %15 = arith.mulf %14, %13 : vector<304x128xf32>
    %16 = math.tanh %15 : vector<304x128xf32>
    %cst_8 = arith.constant 1.000000e+00 : f32
    %17 = vector.broadcast %cst_8 : f32 to vector<304x128xf32>
    %18 = arith.addf %17, %16 : vector<304x128xf32>
    %19 = arith.mulf %8, %18 : vector<304x128xf32>
    %20 = arith.truncf %19 : vector<304x128xf32> to vector<304x128xbf16>
    %c0_9 = arith.constant 0 : index
    %c0_10 = arith.constant 0 : index
    %21 = vector.load %arg4[%c0_9, %c0_10] : memref<128x128xbf16, #tpu.memory_space<vmem>>, vector<128x128xbf16>
    %cst_11 = arith.constant dense<0.000000e+00> : vector<304x128xf32>
    %22 = tpu.matmul %20, %21, %cst_11 {dimension_numbers = #tpu.dot_dimension_numbers<[1], [0], [0], [1], [0, 0, 1, 1], [], []>} : vector<304x128xbf16>, vector<128x128xbf16>, vector<304x128xf32> -> vector<304x128xf32>
    %c0_12 = arith.constant 0 : index
    %c0_13 = arith.constant 0 : index
    %23 = vector.load %arg5[%c0_12, %c0_13] : memref<1x128xf32, #tpu.memory_space<vmem>>, vector<1x128xf32>
    %24 = vector.broadcast %23 : vector<1x128xf32> to vector<304x128xf32>
    %25 = arith.addf %22, %24 : vector<304x128xf32>
    %c0_14 = arith.constant 0 : index
    %c0_15 = arith.constant 0 : index
    %26 = vector.load %arg6[%c0_14, %c0_15] : memref<304x128xf32, #tpu.memory_space<vmem>>, vector<304x128xf32>
    tpu.vector_store %arg6[%c0_14, %c0_15], %25 {strides = array<i32>} : memref<304x128xf32, #tpu.memory_space<vmem>>, vector<304x128xf32>,
    return
  }
  func.func @transform_0(%arg0: i32) -> (i32, i32) {
    %c0_i32 = arith.constant 0 : i32
    %c0_i32_0 = arith.constant 0 : i32
    return %arg0, %c0_i32 : i32, i32
  }
  func.func @transform_1(%arg0: i32) -> (i32, i32) {
    %c0_i32 = arith.constant 0 : i32
    %c0_i32_0 = arith.constant 0 : i32
    %c0_i32_1 = arith.constant 0 : i32
    return %c0_i32, %c0_i32_0 : i32, i32
  }
  func.func @transform_2(%arg0: i32) -> (i32, i32) {
    %c0_i32 = arith.constant 0 : i32
    %c0_i32_0 = arith.constant 0 : i32
    %c0_i32_1 = arith.constant 0 : i32
    return %c0_i32, %c0_i32_0 : i32, i32
  }
  func.func @transform_3(%arg0: i32) -> (i32, i32) {
    %c0_i32 = arith.constant 0 : i32
    %c0_i32_0 = arith.constant 0 : i32
    %c0_i32_1 = arith.constant 0 : i32
    return %c0_i32, %c0_i32_0 : i32, i32
  }
  func.func @transform_4(%arg0: i32) -> (i32, i32) {
    %c0_i32 = arith.constant 0 : i32
    %c0_i32_0 = arith.constant 0 : i32
    %c0_i32_1 = arith.constant 0 : i32
    return %c0_i32, %c0_i32_0 : i32, i32
  }
  func.func @transform_5(%arg0: i32) -> (i32, i32) {
    %c0_i32 = arith.constant 0 : i32
    %c0_i32_0 = arith.constant 0 : i32
    return %arg0, %c0_i32 : i32, i32
  }
}

</mosaic_0001>

<bundles_post_ra>
// kernel: tpu_custom_call.1
= control target key start
LH: loop header
LB: loop body
LE: loop exit
PB: predicated region body
PF: predicated region fallthrough
CT: control target
= control target key end

     0   :  { %10 = vsyncpa [#allocation3], 0  ;;  %s2771_s0 = inlined_call_operand.hbm [shape: f32[600,256], index: 0, kind: input, shape index: {}]   ;;  %s2772_s1 = inlined_call_operand.hbm [shape: bf16[256,128], index: 1, kind: input, shape index: {}]   ;;  %s2773_s2 = inlined_call_operand.vmem [shape: f32[1,128], index: 2, kind: input, shape index: {}]   ;;  %s2774_s3 = inlined_call_operand.hbm [shape: bf16[128,128], index: 3, kind: input, shape index: {}]   ;;  %s2775_s4 = inlined_call_operand.vmem [shape: f32[1,128], index: 4, kind: input, shape index: {}]   ;;  %s2776_s5 = inlined_call_operand.hbm [shape: f32[600,128], index: 5, kind: output, shape index: {}]  }
   0x1   :  { %12 = vsyncpa [#allocation3 + $0x1], 0 }
   0x2   :  { %13 = vsyncpa [#allocation6], 0 }
   0x3   :  { %14 = vsyncpa [#allocation4], 0 }
   0x4   :  { %16 = vsyncpa [#allocation4 + $0x1], 0  ;;  %s2036_s18 = smov 0   ;;  %s2038_s19 = smov 0  }
   0x5   :  { %s2040_s20 = smov 0   ;;  %s2042_s21 = smov 0  }
   0x6 LB: > { %s2057_s22 = sadd.s32 4294967295, %s1991_s21   ;;  %s1493_s23 = sadd.s32 4294967294, %s1991_s21   ;;  %s1991_s21 = sphi %s2042_s21, %s2798_s21   ;;  %s1987_s20 = sphi %s2040_s20, %s2797_s20   ;;  %s1983_s19 = sphi %s2038_s19, %s2796_s19   ;;  %s1979_s18 = sphi %s2036_s18, %s2795_s18  }
   0x7   : > { %s2061_s24 = sadd.s32 1, %s1991_s21   ;;  %s29_s25 = sadd.s32 1, %s1987_s20 }
   0x8   : > { %s26_s26 = ssub.s32 %s1991_s21, %s2061_s24  ;;  %p36_p0 = scmp.ne.s32.totalorder %s1987_s20, %s1983_s19 }
   0x9   : > { %p27_p1 = scmp.eq.s32.totalorder %s26_s26, 0  ;;  %p37_p2 = scmp.eq.s32.totalorder %s1991_s21, 0 }
   0xa   : > { %p42_p3 = scmp.ne.s32.totalorder %s1983_s19, %s1979_s18  ;;  %p2777_p4 = scmp.eq.s32.totalorder %s2057_s22, 0 }
   0xb   : > { %s2073_s27 = scalar_select %p27_p1, %s1987_s20, %s29_s25  }
   0xc   : > { %p2075_p5 = por %p37_p2, %p36_p0  ;;  %p2081_p6 = por %p2777_p4, %p42_p3 }
   0xd   : > { %2780 = sst [smem:[#allocation12_spill]] %s2073_s27  ;;  %p150_p7 = scmp.eq.s32.totalorder %s2057_s22, 1 }
   0xe   : > { %s2781_s28 = scalar_select %p2075_p5, 1, 0 }
   0xf   : > { %s2782_s29 = scalar_select %p2081_p6, 1, 0 }
  0x10   : > { %p156_p8 = scmp.eq.s32.totalorder %s1493_s23, 1  ;;  %p1494_p9 = scmp.ge.s32.totalorder %s1991_s21, 1 }
  0x11   : > { %p163_p10 = scmp.lt.s32.totalorder %s1991_s21, 3  ;;  %p2088_p11 = por %p150_p7, %p36_p0 }
  0x12   : > { %p2092_p12 = por %p156_p8, %p42_p3  ;;  %s1993_s8 = smov [#allocation5]  }
  0x13   : > { %s2783_s30 = scalar_select %p2088_p11, 1, 0 }
  0x14   : > { %s2784_s6 = scalar_select %p2092_p12, 1, 0 }
  0x15   : > { %p2096_p13 = pnand %p1494_p9, %p163_p10  ;;  %s175_s9 = sshll.u32 %s1993_s8, 4  ;;  %s176_s9 = int_to_ptr.vmem [resolvable:$true] %s175_s9 }
  0x16   : > { %s1994_s11 = smov [#allocation7]   ;;  %s1837_s15 = scalar_lea.hbm %s2772_s1, 2048 }
  0x17   : > { %s2785_s7 = scalar_select %p2096_p13, 1, 0 }
  0x18   : > { %p1678_p1 = pneg %p2096_p13  ;;  %s191_s12 = sshll.u32 %s1994_s11, 4  ;;  %s2108_s12 = int_to_ptr.vmem [resolvable:$true] %s191_s12 }
  0x19   : > { %p1838_p0 = scmp.ne.s32.totalorder %s2772_s1, %s1837_s15  ;;  %p1844_p9 = scmp.lt.u32.totalorder %s1837_s15, %s2772_s1 }
  0x1a   : > { %p2104_p2 = pnand %p1678_p1, %p2777_p4 }
  0x1c   : > { %p1839_p3 = pneg %p2104_p2 }
  0x1e   : > { %p1840_p7 = pnand %p1839_p3, %p1838_p0 }
  0x20   : > { %p1841_p8 = pneg %p1840_p7 }
  0x22   : > { %p1846_p10 = pnand %p1844_p9, %p1841_p8 }
  0x24   : > { %1849 = shalt.err (!%p1846_p10)
}
  0x25   : > { %s1850_s26 = scalar_lea.vmem %s176_s9, 2048  ;;  %p1858_p11 = scmp.lt.s32.totalorder %s176_s9, %s176_s9 }
  0x26   : > { %p1851_p1 = scmp.ne.s32.totalorder %s176_s9, %s1850_s26  ;;  %p1859_p6 = scmp.lt.s32.totalorder %s1850_s26, %s1850_s26 }
  0x28   : > { %p1853_p4 = pnand %p1851_p1, %p1839_p3  ;;  %p1860_p13 = por %p1859_p6, %p1858_p11 }
  0x2a   : > { %p1854_p12 = pneg %p1853_p4 }
  0x2c   : > { %p1861_p5 = pnand %p1860_p13, %p1854_p12 }
  0x2e   : > { %1864 = shalt.err (!%p1861_p5)
}
  0x2f   : > { %s1995_s8 = smov 64   ;;  %s1996_s11 = smov 4  }
  0x30   : > { %1681 = dma.hbm_to_vmem [thread:$0]  (!%p2104_p2), %s2772_s1, 2048, %s176_s9, [#allocation6], %s1995_s8, %s1995_s8, %s1996_s11  }
  0x31   : > { %s1865_s17 = scalar_lea.hbm %s2774_s3, 1024 }
  0x32   : > { %p1866_p4 = scmp.ne.s32.totalorder %s2774_s3, %s1865_s17  ;;  %p1872_p11 = scmp.lt.u32.totalorder %s1865_s17, %s2774_s3 }
  0x34   : > { %p1868_p5 = pnand %p1866_p4, %p1839_p3 }
  0x36   : > { %p1869_p6 = pneg %p1868_p5 }
  0x38   : > { %p1874_p12 = pnand %p1872_p11, %p1869_p6 }
  0x3a   : > { %1877 = shalt.err (!%p1874_p12)
}
  0x3b   : > { %s1878_s9 = scalar_lea.vmem %s2108_s12, 1024  ;;  %p1886_p8 = scmp.lt.s32.totalorder %s2108_s12, %s2108_s12 }
  0x3c   : > { %p1879_p13 = scmp.ne.s32.totalorder %s2108_s12, %s1878_s9  ;;  %p1887_p9 = scmp.lt.s32.totalorder %s1878_s9, %s1878_s9 }
  0x3e   : > { %p1881_p0 = pnand %p1879_p13, %p1839_p3  ;;  %p1888_p10 = por %p1887_p9, %p1886_p8 }
  0x40   : > { %p1882_p7 = pneg %p1881_p0 }
  0x42   : > { %p1889_p1 = pnand %p1888_p10, %p1882_p7 }
  0x44   : > { %1892 = shalt.err (!%p1889_p1)
}
  0x45   : > { %1684 = dma.hbm_to_vmem [thread:$0]  (!%p2104_p2), %s2774_s3, 1024, %s2108_s12, [#allocation6], %s1995_s8, %s1995_s8, %s1996_s11  }
  0x46   : > { %p1497_p4 = scmp.ge.s32.totalorder %s1991_s21, 2 }
  0x47   : > { %p2787_p3 = scmp.ne.s32.totalorder (!%p1497_p4), %s2781_s28, 0 }
  0x48   : > { %204 = sbr.rel (%p1497_p4) target bundleno = 114 (0x72), region = 32 }
  0x4f   : > { %207 = sbr.rel (!%p2787_p3) target bundleno = 114 (0x72), region = 36  ;;  %s208_s14 = sand.u32 (%p2787_p3), 1, %s1987_s20  }
  0x50   : > { %s213_s15 = smul.u32 (%p2787_p3), 38, %s1991_s21  ;;  %s2167_s8 = scalar_lea.sflag (%p2787_p3), [#allocation3], %s208_s14 }
  0x51   : > { %s1665_s16 = smul.u32 (%p2787_p3), 608, %s208_s14 }
  0x52   : > { %s214_s17 = ssub.s32 (%p2787_p3), 75, %s213_s15 }
  0x53   : > { %p215_p5 = scmp.lt.s32.totalorder (%p2787_p3), %s214_s17, 38  ;;  %s212_s11 = scalar_lea.vmem (%p2787_p3), [#allocation2], %s1665_s16 }
  0x56   : > { %s2800_s17 = smov (!%p215_p5, %s214_s17), 38 }
  0x57   : > { %s2164_s10 = sshll.u32 %s2800_s17, 8 }
  0x58   : > { %s220_s12 = ssub.s32 9728, %s2164_s10 }
  0x59   : > { %221 = vsyncadd %s2167_s8, %s220_s12  ;;  %p1500_p2 = scmp.ne.s32.totalorder %s2164_s10, 0  ;;  %s1545_s28 = smul.u32 9728, %s1991_s21 }
  0x5a   : > { %s227_s23 = sshll.u32 %s212_s11, 4  ;;  %s1897_s15 = scalar_lea.hbm %s2771_s0, 19200  ;;  %s2177_s23 = int_to_ptr.vmem [resolvable:$true] %s227_s23 }
  0x5b   : > { %s2175_s9 = scalar_lea.hbm %s2771_s0, %s1545_s28 }
  0x5c   : > { %s1893_s27 = scalar_lea.hbm %s2175_s9, %s2164_s10  ;;  %p1898_p13 = scmp.lt.u32.totalorder %s2175_s9, %s2771_s0 }
  0x5d   : > { %p1894_p6 = scmp.ne.s32.totalorder %s2175_s9, %s1893_s27  ;;  %p1899_p0 = scmp.lt.u32.totalorder %s1897_s15, %s1893_s27 }
  0x5e   : > { %p1901_p8 = scmp.lt.u32.totalorder %s1893_s27, %s2175_s9 }
  0x5f   : > { %p1895_p11 = pnand %p1894_p6, %p1500_p2  ;;  %p1900_p7 = por %p1899_p0, %p1898_p13 }
  0x61   : > { %p1896_p12 = pneg %p1895_p11  ;;  %p1902_p9 = por %p1901_p8, %p1900_p7 }
  0x63   : > { %p1903_p10 = pnand %p1902_p9, %p1896_p12 }
  0x65   : > { %1906 = shalt.err (!%p1903_p10)
}
  0x66   : > { %s1907_s12 = scalar_lea.vmem %s2177_s23, %s2164_s10  ;;  %s1997_s11 = smov [#allocation2]  }
  0x67   : > { %p1908_p1 = scmp.ne.s32.totalorder %s2177_s23, %s1907_s12  ;;  %s1911_s28 = sshll.u32 %s1997_s11, 4  ;;  %s1912_s28 = int_to_ptr.vmem [resolvable:$false] %s1911_s28 }
  0x68   : > { %s1913_s25 = scalar_lea.vmem %s1912_s28, 19456  ;;  %p1914_p6 = scmp.lt.s32.totalorder %s2177_s23, %s1912_s28 }
  0x69   : > { %p1909_p3 = pnand %p1908_p1, %p1500_p2  ;;  %p1915_p11 = scmp.lt.s32.totalorder %s1913_s25, %s1907_s12 }
  0x6b   : > { %p1910_p5 = pneg %p1909_p3  ;;  %p1916_p13 = por %p1915_p11, %p1914_p6 }
  0x6d   : > { %p1917_p0 = pnand %p1916_p13, %p1910_p5 }
  0x6f   : > { %1920 = shalt.err (!%p1917_p0)
}
  0x70   : > { %s1998_s26 = smov 256   ;;  %s1999_s27 = smov 16  }
  0x71   : > { %233 = dma.hbm_to_vmem [thread:$0]  (%p1500_p2), %s2175_s9, %s2164_s10, %s2177_s23, %s2167_s8, %s1998_s26, %s1998_s26, %s1999_s27  }
  0x72 PF: > { %p2788_p12 = scmp.ne.s32.totalorder %s2785_s7, 0 }
  0x73   : > { %s2207_s13 = sand.u32 (!%p2788_p12), 1, %s1983_s19   ;;  %p2789_p7 = scmp.ne.s32.totalorder (!%p2788_p12), %s2782_s29, 0 }
  0x74   : > { %239 = sbr.rel (%p2788_p12) target bundleno = 824 (0x338), region = 40  ;;  %s242_s15 = scalar_lea.sflag (!%p2788_p12), [#allocation3], %s2207_s13 }
  0x75   : > { %s1666_s14 = smul.u32 (!%p2788_p12), 608, %s2207_s13 }
  0x77   : > { %s2211_s16 = scalar_lea.vmem (!%p2788_p12), [#allocation2], %s1666_s14 }
  0x7b   : > { %1966 = dma.done.wait (%p2789_p7), %s242_s15, 9728  }
  0x7c   : > { %1968 = vsyncadd (%p2789_p7), %s242_s15, 4294957568  ;;  %p2790_p2 = scmp.eq.s32.totalorder %s2057_s22, 0 }
  0x7e   : > { %1970 = dma.done.wait (%p2790_p2), [#allocation6], 3072   ;;  %p2791_p8 = pmov %p2790_p2 }
  0x7f   : > { %v2000_v0 = vmov 0   ;;  %v1737_v1 = vld [vmem:[#allocation5] sm:$0xff]   ;;  %v1738_v2 = vld [vmem:[#allocation5 + $0x8] sm:$0xff]   ;;  %v1739_v3 = vld [vmem:[#allocation5 + $0x10] sm:$0xff]   ;;  %vm2002_vm0 = vmmov 0   ;;  %s1667_s10 = smul.u32 304, %s2207_s13 }
  0x80   : > { %1972 = vsyncadd (%p2791_p8), [#allocation6], 4294964224  ;;  %541 = vmatprep.subr.bf16.mxu0 %v2000_v0  ;;  %v1740_v4 = vld [vmem:[#allocation5 + $0x18] sm:$0xff]   ;;  %v1741_v5 = vld [vmem:[#allocation5 + $0x20] sm:$0xff]   ;;  %s1382_s17 = scalar_lea.sflag [#allocation4], %s2207_s13  ;;  %p2792_p9 = scmp.ne.s32.totalorder %s2783_s30, 0 }
  0x81   : > { %542 = vmatpush1.bf16.msra.mxu0 %v1737_v1  ;;  %v293_v6 = vld [vmem:[%s2211_s16 + $0x8] sm:$0xff]  ;;  %v295_v7 = vld [vmem:[%s2211_s16 + $0x18] sm:$0xff]  ;;  %v1743_v10 = vld [vmem:[#allocation5 + $0x30] sm:$0xff]   ;;  %s2631_s9 = scalar_lea.vmem [#allocation8], %s1667_s10  ;;  %s1389_s12 = smul.u32 (%p2792_p9), 38, %s2057_s22 }
  0x82   : > { %543 = vmatprep.subr.bf16.mxu0 %v2000_v0  ;;  %v369_v8 = vpack.c.bf16 %v295_v7, %v293_v6  ;;  %v1742_v9 = vld [vmem:[#allocation5 + $0x28] sm:$0xff]   ;;  %v1744_v11 = vld [vmem:[#allocation5 + $0x38] sm:$0xff]   ;;  %v1745_v12 = vld [vmem:[#allocation5 + $0x40] sm:$0xff]  }
  0x83   : > { %v1746_v13 = vld [vmem:[#allocation5 + $0x48] sm:$0xff]   ;;  %v1747_v14 = vld [vmem:[#allocation5 + $0x50] sm:$0xff]   ;;  %v1748_v15 = vld [vmem:[#allocation5 + $0x58] sm:$0xff]   ;;  %s1390_s11 = ssub.s32 (%p2792_p9), 75, %s1389_s12 }
  0x84   : > { %573 = vmatprep.mubr.bf16.mxu0 %v369_v8  ;;  %v1749_v16 = vld [vmem:[#allocation5 + $0x60] sm:$0xff]   ;;  %v1750_v17 = vld [vmem:[#allocation5 + $0x68] sm:$0xff]   ;;  %v1751_v18 = vld [vmem:[#allocation5 + $0x70] sm:$0xff]   ;;  %p1391_p10 = scmp.lt.s32.totalorder (%p2792_p9), %s1390_s11, 38 }
  0x85   : > { %544 = vmatpush1.bf16.msra.mxu0 %v1738_v2  ;;  %v1752_v19 = vld [vmem:[#allocation5 + $0x78] sm:$0xff]   ;;  %v292_v20 = vld [vmem:[%s2211_s16] sm:$0xff]  ;;  %v294_v21 = vld [vmem:[%s2211_s16 + $0x10] sm:$0xff] }
  0x86   : > { %545 = vmatprep.subr.bf16.mxu0 %v2000_v0  ;;  %v297_v22 = vld [vmem:[%s2211_s16 + $0x28] sm:$0xff]  ;;  %v299_v23 = vld [vmem:[%s2211_s16 + $0x38] sm:$0xff]  ;;  %v368_v24 = vpack.c.bf16 %v294_v21, %v292_v20  ;;  %v296_v26 = vld [vmem:[%s2211_s16 + $0x20] sm:$0xff] }
  0x87   : > { %v371_v25 = vpack.c.bf16 %v299_v23, %v297_v22  ;;  %v298_v27 = vld [vmem:[%s2211_s16 + $0x30] sm:$0xff]  ;;  %v301_v28 = vld [vmem:[%s2211_s16 + $0x48] sm:$0xff]  ;;  %v303_v29 = vld [vmem:[%s2211_s16 + $0x58] sm:$0xff] }
  0x88   : > { %v370_v30 = vpack.c.bf16 %v298_v27, %v296_v26  ;;  %v373_v31 = vpack.c.bf16 %v303_v29, %v301_v28  ;;  %v300_v32 = vld [vmem:[%s2211_s16 + $0x40] sm:$0xff]  ;;  %v302_v33 = vld [vmem:[%s2211_s16 + $0x50] sm:$0xff]  ;;  %v305_v34 = vld [vmem:[%s2211_s16 + $0x68] sm:$0xff]  ;;  %v2001_v27 = vmov 0.0  }
  0x89   : > { %546 = vmatpush1.bf16.msra.mxu0 %v1739_v3  ;;  %v307_v35 = vld [vmem:[%s2211_s16 + $0x78] sm:$0xff]  ;;  %v372_v36 = vpack.c.bf16 %v302_v33, %v300_v32  ;;  %v304_v38 = vld [vmem:[%s2211_s16 + $0x60] sm:$0xff]  ;;  %v306_v39 = vld [vmem:[%s2211_s16 + $0x70] sm:$0xff]  ;;  %1573 = vmatprep.subr.bf16.mxu1 %v2001_v27 }
  0x8a   : > { %547 = vmatprep.subr.bf16.mxu0 %v2000_v0  ;;  %v375_v37 = vpack.c.bf16 %v307_v35, %v305_v34  ;;  %v309_v40 = vld [vmem:[%s2211_s16 + $0x88] sm:$0xff]  ;;  %v311_v41 = vld [vmem:[%s2211_s16 + $0x98] sm:$0xff]  ;;  %v374_v42 = vpack.c.bf16 %v306_v39, %v304_v38  ;;  %v308_v44 = vld [vmem:[%s2211_s16 + $0x80] sm:$0xff]  ;;  %1589 = vmatprep.mubr.msk.bf16.mxu1 %vm2002_vm0, %v2001_v27 }
  0x8b   : > { %v377_v43 = vpack.c.bf16 %v311_v41, %v309_v40  ;;  %v310_v45 = vld [vmem:[%s2211_s16 + $0x90] sm:$0xff]  ;;  %v313_v46 = vld [vmem:[%s2211_s16 + $0xa8] sm:$0xff]  ;;  %v315_v47 = vld [vmem:[%s2211_s16 + $0xb8] sm:$0xff] }
  0x8c   : > { %v376_v48 = vpack.c.bf16 %v310_v45, %v308_v44  ;;  %v379_v49 = vpack.c.bf16 %v315_v47, %v313_v46  ;;  %v312_v50 = vld [vmem:[%s2211_s16 + $0xa0] sm:$0xff]  ;;  %v314_v51 = vld [vmem:[%s2211_s16 + $0xb0] sm:$0xff]  ;;  %v317_v52 = vld [vmem:[%s2211_s16 + $0xc8] sm:$0xff] }
  0x8d   : > { %548 = vmatpush1.bf16.msra.mxu0 %v1740_v4  ;;  %v319_v53 = vld [vmem:[%s2211_s16 + $0xd8] sm:$0xff]  ;;  %v378_v54 = vpack.c.bf16 %v314_v51, %v312_v50  ;;  %v316_v56 = vld [vmem:[%s2211_s16 + $0xc0] sm:$0xff]  ;;  %v318_v57 = vld [vmem:[%s2211_s16 + $0xd0] sm:$0xff] }
  0x8e   : > { %549 = vmatprep.subr.bf16.mxu0 %v2000_v0  ;;  %v381_v55 = vpack.c.bf16 %v319_v53, %v317_v52  ;;  %v321_v58 = vld [vmem:[%s2211_s16 + $0xe8] sm:$0xff]  ;;  %v323_v59 = vld [vmem:[%s2211_s16 + $0xf8] sm:$0xff]  ;;  %v380_v60 = vpack.c.bf16 %v318_v57, %v316_v56  ;;  %v320_v62 = vld [vmem:[%s2211_s16 + $0xe0] sm:$0xff] }
  0x8f   : > { %v383_v61 = vpack.c.bf16 %v323_v59, %v321_v58  ;;  %v322_v63 = vld [vmem:[%s2211_s16 + $0xf0] sm:$0xff]  ;;  %v327_v1 = vld [vmem:[%s2211_s16 + $0x118] sm:$0xff]  ;;  %v324_v4 = vld [vmem:[%s2211_s16 + $0x100] sm:$0xff] }
  0x90   : > { %v382_v2 = vpack.c.bf16 %v322_v63, %v320_v62  ;;  %v329_v6 = vld [vmem:[%s2211_s16 + $0x128] sm:$0xff]  ;;  %v331_v7 = vld [vmem:[%s2211_s16 + $0x138] sm:$0xff]  ;;  %v336_v22 = vld [vmem:[%s2211_s16 + $0x160] sm:$0xff] }
  0x91   : > { %550 = vmatpush1.bf16.msra.mxu0 %v1741_v5  ;;  %v326_v5 = vld [vmem:[%s2211_s16 + $0x110] sm:$0xff]  ;;  %v1753_v26 = vld [vmem:[#allocation7] sm:$0xff]   ;;  %v345_v33 = vld [vmem:[%s2211_s16 + $0x1a8] sm:$0xff] }
  0x92   : > { %551 = vmatprep.subr.bf16.mxu0 %v2000_v0  ;;  %v384_v8 = vpack.c.bf16 %v326_v5, %v324_v4  ;;  %v338_v23 = vld [vmem:[%s2211_s16 + $0x170] sm:$0xff]  ;;  %1574 = vmatpush3.bf16.msra.mxu1 %v1753_v26  ;;  %v347_v34 = vld [vmem:[%s2211_s16 + $0x1b8] sm:$0xff]  ;;  %v344_v39 = vld [vmem:[%s2211_s16 + $0x1a0] sm:$0xff] }
  0x93   : > { %v390_v28 = vpack.c.bf16 %v338_v23, %v336_v22  ;;  %1575 = vmatprep.subr.bf16.mxu1 %v2001_v27  ;;  %v342_v32 = vld [vmem:[%s2211_s16 + $0x190] sm:$0xff]  ;;  %v1756_v38 = vld [vmem:[#allocation7 + $0x18] sm:$0xff]   ;;  %v349_v41 = vld [vmem:[%s2211_s16 + $0x1c8] sm:$0xff] }
  0x94   : > { %v1755_v35 = vld [vmem:[#allocation7 + $0x10] sm:$0xff]   ;;  %v1758_v46 = vld [vmem:[#allocation7 + $0x28] sm:$0xff]   ;;  %v348_v47 = vld [vmem:[%s2211_s16 + $0x1c0] sm:$0xff] }
  0x95   : > { %552 = vmatpush1.bf16.msra.mxu0 %v1742_v9  ;;  %v387_v9 = vpack.c.bf16 %v331_v7, %v329_v6  ;;  %v346_v40 = vld [vmem:[%s2211_s16 + $0x1b0] sm:$0xff]  ;;  %v355_v50 = vld [vmem:[%s2211_s16 + $0x1f8] sm:$0xff]  ;;  %v357_v57 = vld [vmem:[%s2211_s16 + $0x208] sm:$0xff] }
  0x96   : > { %553 = vmatprep.subr.bf16.mxu0 %v2000_v0  ;;  %v394_v44 = vpack.c.bf16 %v346_v40, %v344_v39  ;;  %v1759_v51 = vld [vmem:[#allocation7 + $0x30] sm:$0xff]   ;;  %v359_v58 = vld [vmem:[%s2211_s16 + $0x218] sm:$0xff]  ;;  %v361_v63 = vld [vmem:[%s2211_s16 + $0x228] sm:$0xff] }
  0x97   : > { %v354_v56 = vld [vmem:[%s2211_s16 + $0x1f0] sm:$0xff]  ;;  %v365_v5 = vld [vmem:[%s2211_s16 + $0x248] sm:$0xff]  ;;  %v367_v6 = vld [vmem:[%s2211_s16 + $0x258] sm:$0xff] }
  0x98   : > { %v358_v62 = vld [vmem:[%s2211_s16 + $0x210] sm:$0xff] }
  0x99   : > { %554 = vmatpush1.bf16.msra.mxu0 %v1743_v10  ;;  %v328_v10 = vld [vmem:[%s2211_s16 + $0x120] sm:$0xff]  ;;  %v362_v4 = vld [vmem:[%s2211_s16 + $0x230] sm:$0xff] }
  0x9a   : > { %555 = vmatprep.subr.bf16.mxu0 %v2000_v0 }
  0x9d   : > { %556 = vmatpush1.bf16.msra.mxu0 %v1744_v11  ;;  %v330_v11 = vld [vmem:[%s2211_s16 + $0x130] sm:$0xff] }
  0x9e   : > { %557 = vmatprep.subr.bf16.mxu0 %v2000_v0 }
  0xa1   : > { %558 = vmatpush1.bf16.msra.mxu0 %v1745_v12  ;;  %v333_v12 = vld [vmem:[%s2211_s16 + $0x148] sm:$0xff] }
  0xa2   : > { %559 = vmatprep.subr.bf16.mxu0 %v2000_v0 }
  0xa5   : > { %560 = vmatpush1.bf16.msra.mxu0 %v1746_v13  ;;  %v335_v13 = vld [vmem:[%s2211_s16 + $0x158] sm:$0xff] }
  0xa6   : > { %561 = vmatprep.subr.bf16.mxu0 %v2000_v0 }
  0xa9   : > { %562 = vmatpush1.bf16.msra.mxu0 %v1747_v14  ;;  %v386_v14 = vpack.c.bf16 %v330_v11, %v328_v10  ;;  %v366_v10 = vld [vmem:[%s2211_s16 + $0x250] sm:$0xff] }
  0xaa   : > { %563 = vmatprep.subr.bf16.mxu0 %v2000_v0 }
  0xad   : > { %564 = vmatpush1.bf16.msra.mxu0 %v1748_v15  ;;  %v389_v15 = vpack.c.bf16 %v335_v13, %v333_v12  ;;  %v2310_v12 = vld [vmem:[%s2773_s2] ss:$0 sm:$0xff] }
  0xae   : > { %565 = vmatprep.subr.bf16.mxu0 %v2000_v0 }
  0xb1   : > { %566 = vmatpush1.bf16.msra.mxu0 %v1749_v16  ;;  %v332_v16 = vld [vmem:[%s2211_s16 + $0x140] sm:$0xff] }
  0xb2   : > { %567 = vmatprep.subr.bf16.mxu0 %v2000_v0 }
  0xb5   : > { %568 = vmatpush1.bf16.msra.mxu0 %v1750_v17  ;;  %v334_v17 = vld [vmem:[%s2211_s16 + $0x150] sm:$0xff] }
  0xb6   : > { %569 = vmatprep.subr.bf16.mxu0 %v2000_v0  ;;  %v388_v20 = vpack.c.bf16 %v334_v17, %v332_v16 }
  0xb9   : > { %570 = vmatpush1.bf16.msra.mxu0 %v1751_v18  ;;  %v337_v18 = vld [vmem:[%s2211_s16 + $0x168] sm:$0xff] }
  0xba   : > { %571 = vmatprep.subr.bf16.mxu0 %v2000_v0  ;;  %v325_v0 = vld [vmem:[%s2211_s16 + $0x108] sm:$0xff] }
  0xbb   : > { %v385_v3 = vpack.c.bf16 %v327_v1, %v325_v0  ;;  %v363_v0 = vld [vmem:[%s2211_s16 + $0x238] sm:$0xff] }
  0xbd   : > { %572 = vmatpush1.bf16.msra.mxu0 %v1752_v19  ;;  %v339_v19 = vld [vmem:[%s2211_s16 + $0x178] sm:$0xff] }
  0xbe   : > { %v391_v21 = vpack.c.bf16 %v339_v19, %v337_v18 }
  0xc0   : > { %574 = vmatmul.mubr.bf16.vlgmr.msra.gmra.mrb[0].mxu0 %v368_v24  ;;  %v341_v24 = vld [vmem:[%s2211_s16 + $0x188] sm:$0xff] }
  0xc1   : > { %581 = vmatprep.mubr.bf16.mxu0 %v371_v25  ;;  %v343_v25 = vld [vmem:[%s2211_s16 + $0x198] sm:$0xff] }
  0xc2   : > { %v393_v29 = vpack.c.bf16 %v343_v25, %v341_v24 }
  0xc8   : > { %582 = vmatmul.mubr.bf16.gmra.mrb[4].mxu0 %v370_v30  ;;  %v1754_v30 = vld [vmem:[#allocation7 + $0x8] sm:$0xff]  }
  0xc9   : > { %589 = vmatprep.mubr.bf16.mxu0 %v373_v31  ;;  %1576 = vmatpush3.bf16.msra.mxu1 %v1754_v30  ;;  %v340_v31 = vld [vmem:[%s2211_s16 + $0x180] sm:$0xff] }
  0xca   : > { %1577 = vmatprep.subr.bf16.mxu1 %v2001_v27 }
  0xcd   : > { %1578 = vmatpush3.bf16.msra.mxu1 %v1755_v35 }
  0xce   : > { %1579 = vmatprep.subr.bf16.mxu1 %v2001_v27 }
  0xd0   : > { %590 = vmatmul.mubr.bf16.gmra.mrb[8].mxu0 %v372_v36  ;;  %v392_v36 = vpack.c.bf16 %v342_v32, %v340_v31 }
  0xd1   : > { %597 = vmatprep.mubr.bf16.mxu0 %v375_v37  ;;  %v395_v37 = vpack.c.bf16 %v347_v34, %v345_v33  ;;  %1580 = vmatpush3.bf16.msra.mxu1 %v1756_v38 }
  0xd2   : > { %1581 = vmatprep.subr.bf16.mxu1 %v2001_v27 }
  0xd8   : > { %598 = vmatmul.mubr.bf16.gmra.mrb[12].mxu0 %v374_v42  ;;  %v351_v42 = vld [vmem:[%s2211_s16 + $0x1d8] sm:$0xff] }
  0xd9   : > { %605 = vmatprep.mubr.bf16.mxu0 %v377_v43  ;;  %v1757_v43 = vld [vmem:[#allocation7 + $0x20] sm:$0xff]   ;;  %v397_v45 = vpack.c.bf16 %v351_v42, %v349_v41 }
  0xda   : > { %1582 = vmatpush3.bf16.msra.mxu1 %v1757_v43 }
  0xdb   : > { %1583 = vmatprep.subr.bf16.mxu1 %v2001_v27 }
  0xde   : > { %1584 = vmatpush3.bf16.msra.mxu1 %v1758_v46 }
  0xdf   : > { %1585 = vmatprep.subr.bf16.mxu1 %v2001_v27 }
  0xe0   : > { %606 = vmatmul.mubr.bf16.gmra.mrb[16].mxu0 %v376_v48  ;;  %v350_v48 = vld [vmem:[%s2211_s16 + $0x1d0] sm:$0xff] }
  0xe1   : > { %613 = vmatprep.mubr.bf16.mxu0 %v379_v49  ;;  %v353_v49 = vld [vmem:[%s2211_s16 + $0x1e8] sm:$0xff]  ;;  %v396_v52 = vpack.c.bf16 %v350_v48, %v348_v47 }
  0xe2   : > { %1586 = vmatpush3.bf16.msra.mxu1 %v1759_v51  ;;  %v399_v53 = vpack.c.bf16 %v355_v50, %v353_v49 }
  0xe3   : > { %1587 = vmatprep.subr.bf16.mxu1 %v2001_v27 }
  0xe8   : > { %614 = vmatmul.mubr.bf16.gmra.mrb[20].mxu0 %v378_v54  ;;  %v1760_v54 = vld [vmem:[#allocation7 + $0x38] sm:$0xff]  }
  0xe9   : > { %621 = vmatprep.mubr.bf16.mxu0 %v381_v55  ;;  %1588 = vmatpush3.bf16.msra.mxu1 %v1760_v54  ;;  %v352_v55 = vld [vmem:[%s2211_s16 + $0x1e0] sm:$0xff] }
  0xea   : > { %v398_v59 = vpack.c.bf16 %v354_v56, %v352_v55 }
  0xf0   : > { %622 = vmatmul.mubr.bf16.gmra.mrb[24].mxu0 %v380_v60  ;;  %v401_v60 = vpack.c.bf16 %v359_v58, %v357_v57 }
  0xf1   : > { %629 = vmatprep.mubr.bf16.mxu0 %v383_v61  ;;  %v356_v61 = vld [vmem:[%s2211_s16 + $0x200] sm:$0xff] }
  0xf2   : > { %v400_v1 = vpack.c.bf16 %v358_v62, %v356_v61 }
  0xf8   : > { %630 = vmatmul.mubr.bf16.gmra.mrb[28].mxu0 %v382_v2  ;;  %v403_v2 = vpack.c.bf16 %v363_v0, %v361_v63 }
  0xf9   : > { %637 = vmatprep.mubr.bf16.mxu0 %v385_v3  ;;  %v360_v3 = vld [vmem:[%s2211_s16 + $0x220] sm:$0xff] }
  0xfa   : > { %v402_v7 = vpack.c.bf16 %v362_v4, %v360_v3 }
 0x100   : > { %638 = vmatmul.mubr.bf16.gmra.mrb[32].mxu0 %v384_v8  ;;  %v405_v8 = vpack.c.bf16 %v367_v6, %v365_v5 }
 0x101   : > { %645 = vmatprep.mubr.bf16.mxu0 %v387_v9  ;;  %v364_v9 = vld [vmem:[%s2211_s16 + $0x240] sm:$0xff] }
 0x102   : > { %v404_v11 = vpack.c.bf16 %v366_v10, %v364_v9 }
 0x108   : > { %646 = vmatmul.mubr.bf16.gmra.mrb[36].mxu0 %v386_v14 }
 0x109   : > { %653 = vmatprep.mubr.bf16.mxu0 %v389_v15 }
 0x110   : > { %654 = vmatmul.mubr.bf16.gmra.mrb[40].mxu0 %v388_v20 }
 0x111   : > { %661 = vmatprep.mubr.bf16.mxu0 %v391_v21 }
 0x118   : > { %662 = vmatmul.mubr.bf16.gmra.mrb[44].mxu0 %v390_v28 }
 0x119   : > { %669 = vmatprep.mubr.bf16.mxu0 %v393_v29 }
 0x120   : > { %670 = vmatmul.mubr.bf16.gmra.mrb[48].mxu0 %v392_v36 }
 0x121   : > { %677 = vmatprep.mubr.bf16.mxu0 %v395_v37 }
 0x128   : > { %678 = vmatmul.mubr.bf16.gmra.mrb[52].mxu0 %v394_v44 }
 0x129   : > { %685 = vmatprep.mubr.bf16.mxu0 %v397_v45 }
 0x130   : > { %686 = vmatmul.mubr.bf16.gmra.mrb[56].mxu0 %v396_v52 }
 0x131   : > { %693 = vmatprep.mubr.bf16.mxu0 %v399_v53 }
 0x138   : > { %694 = vmatmul.mubr.bf16.gmra.mrb[60].mxu0 %v398_v59 }
 0x139   : > { %701 = vmatprep.mubr.bf16.mxu0 %v401_v60 }
 0x140   : > { %702 = vmatmul.mubr.bf16.gmra.mrb[64].mxu0 %v400_v1 }
 0x141   : > { %709 = vmatprep.mubr.bf16.mxu0 %v403_v2 }
 0x148   : > { %710 = vmatmul.mubr.bf16.gmra.mrb[68].mxu0 %v402_v7 }
 0x149   : > { %717 = vmatprep.mubr.bf16.mxu0 %v405_v8 }
 0x150   : > { %718 = vmatmul.mubr.bf16.gmra.mrb[72].mxu0 %v404_v11 }
 0x193   : > { %v575_v13 = vpop.f32.mrb[0].mxu0 }
 0x194   : > { %v576_v14 = vadd.f32 %v2310_v12, %v575_v13  ;;  %v577_v15 = vpop.f32.mrb[1].mxu0 }
 0x195   : > { %v578_v16 = vpop.f32.mrb[2].mxu0 }
 0x196   : > { %v764_v17 = vmul.f32 0.044715, %v576_v14  ;;  %v579_v18 = vadd.f32 %v2310_v12, %v578_v16  ;;  %v580_v19 = vpop.f32.mrb[3].mxu0  ;;  %v726_v2 = vmul.f32 0.5, %v576_v14 }
 0x198   : > { %v802_v20 = vmul.f32 %v764_v17, %v576_v14  ;;  %v765_v21 = vmul.f32 0.044715, %v579_v18  ;;  %v727_v3 = vmul.f32 0.5, %v579_v18 }
 0x19a   : > { %v840_v22 = vmul.f32 %v802_v20, %v576_v14  ;;  %v803_v23 = vmul.f32 %v765_v21, %v579_v18 }
 0x19b   : > { %v583_v24 = vpop.f32.mrb[4].mxu0 }
 0x19c   : > { %v841_v25 = vmul.f32 %v803_v23, %v579_v18  ;;  %v2315_v26 = vadd.f32 %v2310_v12, %v583_v24  ;;  %v585_v28 = vpop.f32.mrb[5].mxu0  ;;  %v878_v29 = vadd.f32 %v840_v22, %v576_v14 }
 0x19d   : > { %v586_v30 = vpop.f32.mrb[6].mxu0 }
 0x19e   : > { %v766_v31 = vmul.f32 0.044715, %v2315_v26  ;;  %v2319_v32 = vadd.f32 %v2310_v12, %v586_v30  ;;  %v588_v33 = vpop.f32.mrb[7].mxu0  ;;  %v879_v34 = vadd.f32 %v841_v25, %v579_v18  ;;  %v916_v35 = vmul.f32 0.7978846, %v878_v29 }
 0x19f   : > { %v728_v30 = vmul.f32 0.5, %v2315_v26 }
 0x1a0   : > { %v804_v36 = vmul.f32 %v766_v31, %v2315_v26  ;;  %v767_v37 = vmul.f32 0.044715, %v2319_v32  ;;  %v917_v38 = vmul.f32 0.7978846, %v879_v34  ;;  %1761 = vtanh.f32 %v916_v35 }
 0x1a1   : > { %v729_v31 = vmul.f32 0.5, %v2319_v32 }
 0x1a2   : > { %v842_v39 = vmul.f32 %v804_v36, %v2315_v26  ;;  %v805_v40 = vmul.f32 %v767_v37, %v2319_v32  ;;  %1763 = vtanh.f32 %v917_v38 }
 0x1a3   : > { %v591_v41 = vpop.f32.mrb[8].mxu0 }
 0x1a4   : > { %v843_v42 = vmul.f32 %v805_v40, %v2319_v32  ;;  %v2327_v43 = vadd.f32 %v2310_v12, %v591_v41  ;;  %v593_v44 = vpop.f32.mrb[9].mxu0  ;;  %v880_v45 = vadd.f32 %v842_v39, %v2315_v26 }
 0x1a5   : > { %v594_v46 = vpop.f32.mrb[10].mxu0 }
 0x1a6   : > { %v768_v47 = vmul.f32 0.044715, %v2327_v43  ;;  %v2332_v48 = vadd.f32 %v2310_v12, %v594_v46  ;;  %v596_v49 = vpop.f32.mrb[11].mxu0  ;;  %v881_v50 = vadd.f32 %v843_v42, %v2319_v32  ;;  %v918_v51 = vmul.f32 0.7978846, %v880_v45 }
 0x1a8   : > { %v806_v52 = vmul.f32 %v768_v47, %v2327_v43  ;;  %v769_v53 = vmul.f32 0.044715, %v2332_v48  ;;  %v919_v54 = vmul.f32 0.7978846, %v881_v50  ;;  %1765 = vtanh.f32 %v918_v51 }
 0x1aa   : > { %v1762_v55 = vpop.eup %1761  ;;  %v844_v56 = vmul.f32 %v806_v52, %v2327_v43  ;;  %v807_v57 = vmul.f32 %v769_v53, %v2332_v48  ;;  %1767 = vtanh.f32 %v919_v54 }
 0x1ab   : > { %v599_v58 = vpop.f32.mrb[12].mxu0  ;;  %v992_v59 = vadd.f32 1.0, %v1762_v55 }
 0x1ac   : > { %v1764_v60 = vpop.eup %1763  ;;  %v845_v61 = vmul.f32 %v807_v57, %v2332_v48  ;;  %v2341_v62 = vadd.f32 %v2310_v12, %v599_v58  ;;  %v601_v63 = vpop.f32.mrb[13].mxu0  ;;  %v882_v0 = vadd.f32 %v844_v56, %v2327_v43  ;;  %v730_v56 = vmul.f32 0.5, %v2327_v43 }
 0x1ad   : > { %v602_v1 = vpop.f32.mrb[14].mxu0  ;;  %v993_v4 = vadd.f32 1.0, %v1764_v60  ;;  %v1030_v10 = vmul.f32 %v992_v59, %v726_v2  ;;  %v731_v57 = vmul.f32 0.5, %v2332_v48 }
 0x1ae   : > { %v770_v5 = vmul.f32 0.044715, %v2341_v62  ;;  %v2346_v6 = vadd.f32 %v2310_v12, %v602_v1  ;;  %v604_v7 = vpop.f32.mrb[15].mxu0  ;;  %v883_v8 = vadd.f32 %v845_v61, %v2332_v48  ;;  %v920_v9 = vmul.f32 0.7978846, %v882_v0 }
 0x1af   : > { %v1031_v11 = vmul.f32 %v993_v4, %v727_v3 }
 0x1b0   : > { %v808_v13 = vmul.f32 %v770_v5, %v2341_v62  ;;  %v771_v15 = vmul.f32 0.044715, %v2346_v6  ;;  %v921_v16 = vmul.f32 0.7978846, %v883_v8  ;;  %1769 = vtanh.f32 %v920_v9 }
 0x1b1   : > { %v1068_v14 = vpack.c.bf16 %v1031_v11, %v1030_v10 }
 0x1b2   : > { %v1766_v17 = vpop.eup %1765  ;;  %v846_v18 = vmul.f32 %v808_v13, %v2341_v62  ;;  %v809_v19 = vmul.f32 %v771_v15, %v2346_v6  ;;  %1771 = vtanh.f32 %v921_v16 }
 0x1b3   : > { %v607_v20 = vpop.f32.mrb[16].mxu0  ;;  %1590 = vmatmul.mubr.bf16.vlgmr.msra.gmra.mrb[0].mxu1 %v1068_v14  ;;  %v994_v21 = vadd.f32 1.0, %v1766_v17 }
 0x1b4   : > { %v1768_v22 = vpop.eup %1767  ;;  %v847_v23 = vmul.f32 %v809_v19, %v2346_v6  ;;  %v2355_v24 = vadd.f32 %v2310_v12, %v607_v20  ;;  %v609_v25 = vpop.f32.mrb[17].mxu0  ;;  %1593 = vmatprep.mubr.msk.bf16.mxu1 %vm2002_vm0, %v2001_v27  ;;  %v884_v28 = vadd.f32 %v846_v18, %v2341_v62  ;;  %v732_v18 = vmul.f32 0.5, %v2341_v62 }
 0x1b5   : > { %v610_v29 = vpop.f32.mrb[18].mxu0  ;;  %v995_v33 = vadd.f32 1.0, %v1768_v22  ;;  %v1032_v39 = vmul.f32 %v994_v21, %v728_v30  ;;  %v733_v19 = vmul.f32 0.5, %v2346_v6 }
 0x1b6   : > { %v772_v34 = vmul.f32 0.044715, %v2355_v24  ;;  %v2364_v35 = vadd.f32 %v2310_v12, %v610_v29  ;;  %v612_v36 = vpop.f32.mrb[19].mxu0  ;;  %v885_v37 = vadd.f32 %v847_v23, %v2346_v6  ;;  %v922_v38 = vmul.f32 0.7978846, %v884_v28 }
 0x1b7   : > { %v1033_v40 = vmul.f32 %v995_v33, %v729_v31 }
 0x1b8   : > { %v810_v41 = vmul.f32 %v772_v34, %v2355_v24  ;;  %v773_v42 = vmul.f32 0.044715, %v2364_v35  ;;  %v923_v44 = vmul.f32 0.7978846, %v885_v37  ;;  %1773 = vtanh.f32 %v922_v38 }
 0x1b9   : > { %v1069_v26 = vpack.c.bf16 %v1033_v40, %v1032_v39 }
 0x1ba   : > { %v1770_v32 = vpop.eup %1769  ;;  %v848_v45 = vmul.f32 %v810_v41, %v2355_v24  ;;  %v811_v46 = vmul.f32 %v773_v42, %v2364_v35  ;;  %1775 = vtanh.f32 %v923_v44 }
 0x1bb   : > { %v615_v47 = vpop.f32.mrb[20].mxu0  ;;  %1594 = vmatmul.mubr.bf16.gmra.mrb[4].mxu1 %v1069_v26  ;;  %v996_v49 = vadd.f32 1.0, %v1770_v32 }
 0x1bc   : > { %v1772_v50 = vpop.eup %1771  ;;  %v849_v51 = vmul.f32 %v811_v46, %v2364_v35  ;;  %v2373_v52 = vadd.f32 %v2310_v12, %v615_v47  ;;  %v617_v53 = vpop.f32.mrb[21].mxu0  ;;  %1597 = vmatprep.mubr.msk.bf16.mxu1 %vm2002_vm0, %v2001_v27  ;;  %v886_v54 = vadd.f32 %v848_v45, %v2355_v24  ;;  %v734_v45 = vmul.f32 0.5, %v2355_v24 }
 0x1bd   : > { %v618_v55 = vpop.f32.mrb[22].mxu0  ;;  %v997_v58 = vadd.f32 1.0, %v1772_v50  ;;  %v1034_v1 = vmul.f32 %v996_v49, %v730_v56  ;;  %v735_v46 = vmul.f32 0.5, %v2364_v35 }
 0x1be   : > { %v774_v59 = vmul.f32 0.044715, %v2373_v52  ;;  %v2382_v60 = vadd.f32 %v2310_v12, %v618_v55  ;;  %v620_v61 = vpop.f32.mrb[23].mxu0  ;;  %v887_v63 = vadd.f32 %v849_v51, %v2364_v35  ;;  %v924_v0 = vmul.f32 0.7978846, %v886_v54 }
 0x1bf   : > { %v1035_v2 = vmul.f32 %v997_v58, %v731_v57 }
 0x1c0   : > { %v812_v3 = vmul.f32 %v774_v59, %v2373_v52  ;;  %v775_v4 = vmul.f32 0.044715, %v2382_v60  ;;  %v925_v5 = vmul.f32 0.7978846, %v887_v63  ;;  %1777 = vtanh.f32 %v924_v0 }
 0x1c1   : > { %v1070_v43 = vpack.c.bf16 %v1035_v2, %v1034_v1 }
 0x1c2   : > { %v1774_v48 = vpop.eup %1773  ;;  %v850_v7 = vmul.f32 %v812_v3, %v2373_v52  ;;  %v813_v8 = vmul.f32 %v775_v4, %v2382_v60  ;;  %1779 = vtanh.f32 %v925_v5 }
 0x1c3   : > { %v623_v9 = vpop.f32.mrb[24].mxu0  ;;  %1598 = vmatmul.mubr.bf16.gmra.mrb[8].mxu1 %v1070_v43  ;;  %v998_v10 = vadd.f32 1.0, %v1774_v48 }
 0x1c4   : > { %v1776_v11 = vpop.eup %1775  ;;  %v851_v13 = vmul.f32 %v813_v8, %v2382_v60  ;;  %v2391_v15 = vadd.f32 %v2310_v12, %v623_v9  ;;  %v625_v16 = vpop.f32.mrb[25].mxu0  ;;  %1601 = vmatprep.mubr.msk.bf16.mxu1 %vm2002_vm0, %v2001_v27  ;;  %v888_v14 = vadd.f32 %v850_v7, %v2373_v52  ;;  %v736_v7 = vmul.f32 0.5, %v2373_v52 }
 0x1c5   : > { %v626_v17 = vpop.f32.mrb[26].mxu0  ;;  %v999_v20 = vadd.f32 1.0, %v1776_v11  ;;  %v1036_v29 = vmul.f32 %v998_v10, %v732_v18  ;;  %v737_v8 = vmul.f32 0.5, %v2382_v60 }
 0x1c6   : > { %v776_v21 = vmul.f32 0.044715, %v2391_v15  ;;  %v2400_v22 = vadd.f32 %v2310_v12, %v626_v17  ;;  %v628_v23 = vpop.f32.mrb[27].mxu0  ;;  %v889_v25 = vadd.f32 %v851_v13, %v2382_v60  ;;  %v926_v28 = vmul.f32 0.7978846, %v888_v14 }
 0x1c7   : > { %v1037_v30 = vmul.f32 %v999_v20, %v733_v19 }
 0x1c8   : > { %v814_v31 = vmul.f32 %v776_v21, %v2391_v15  ;;  %v777_v33 = vmul.f32 0.044715, %v2400_v22  ;;  %v927_v34 = vmul.f32 0.7978846, %v889_v25  ;;  %1781 = vtanh.f32 %v926_v28 }
 0x1c9   : > { %v1071_v62 = vpack.c.bf16 %v1037_v30, %v1036_v29 }
 0x1ca   : > { %v1778_v6 = vpop.eup %1777  ;;  %v852_v36 = vmul.f32 %v814_v31, %v2391_v15  ;;  %v815_v37 = vmul.f32 %v777_v33, %v2400_v22  ;;  %1783 = vtanh.f32 %v927_v34 }
 0x1cb   : > { %v631_v38 = vpop.f32.mrb[28].mxu0  ;;  %1602 = vmatmul.mubr.bf16.gmra.mrb[12].mxu1 %v1071_v62  ;;  %v1000_v39 = vadd.f32 1.0, %v1778_v6 }
 0x1cc   : > { %v1780_v40 = vpop.eup %1779  ;;  %v853_v41 = vmul.f32 %v815_v37, %v2400_v22  ;;  %v2409_v42 = vadd.f32 %v2310_v12, %v631_v38  ;;  %v633_v44 = vpop.f32.mrb[29].mxu0  ;;  %1605 = vmatprep.mubr.msk.bf16.mxu1 %vm2002_vm0, %v2001_v27  ;;  %v890_v26 = vadd.f32 %v852_v36, %v2391_v15  ;;  %v738_v36 = vmul.f32 0.5, %v2391_v15 }
 0x1cd   : > { %v634_v32 = vpop.f32.mrb[30].mxu0  ;;  %v1001_v47 = vadd.f32 1.0, %v1780_v40  ;;  %v1038_v55 = vmul.f32 %v1000_v39, %v734_v45  ;;  %v739_v37 = vmul.f32 0.5, %v2400_v22 }
 0x1ce   : > { %v778_v49 = vmul.f32 0.044715, %v2409_v42  ;;  %v2418_v50 = vadd.f32 %v2310_v12, %v634_v32  ;;  %v636_v51 = vpop.f32.mrb[31].mxu0  ;;  %v891_v53 = vadd.f32 %v853_v41, %v2400_v22  ;;  %v928_v54 = vmul.f32 0.7978846, %v890_v26 }
 0x1cf   : > { %v1039_v56 = vmul.f32 %v1001_v47, %v735_v46 }
 0x1d0   : > { %v816_v57 = vmul.f32 %v778_v49, %v2409_v42  ;;  %v779_v58 = vmul.f32 0.044715, %v2418_v50  ;;  %v929_v59 = vmul.f32 0.7978846, %v891_v53  ;;  %1785 = vtanh.f32 %v928_v54 }
 0x1d1   : > { %v1072_v24 = vpack.c.bf16 %v1039_v56, %v1038_v55 }
 0x1d2   : > { %v1782_v35 = vpop.eup %1781  ;;  %v854_v61 = vmul.f32 %v816_v57, %v2409_v42  ;;  %v817_v63 = vmul.f32 %v779_v58, %v2418_v50  ;;  %1787 = vtanh.f32 %v929_v59 }
 0x1d3   : > { %v639_v0 = vpop.f32.mrb[32].mxu0  ;;  %1606 = vmatmul.mubr.bf16.gmra.mrb[16].mxu1 %v1072_v24  ;;  %v1002_v1 = vadd.f32 1.0, %v1782_v35 }
 0x1d4   : > { %v1784_v2 = vpop.eup %1783  ;;  %v855_v3 = vmul.f32 %v817_v63, %v2418_v50  ;;  %v2427_v4 = vadd.f32 %v2310_v12, %v639_v0  ;;  %v641_v5 = vpop.f32.mrb[33].mxu0  ;;  %1609 = vmatprep.mubr.msk.bf16.mxu1 %vm2002_vm0, %v2001_v27  ;;  %v892_v43 = vadd.f32 %v854_v61, %v2409_v42  ;;  %v740_v61 = vmul.f32 0.5, %v2409_v42 }
 0x1d5   : > { %v642_v48 = vpop.f32.mrb[34].mxu0  ;;  %v1003_v9 = vadd.f32 1.0, %v1784_v2  ;;  %v1040_v17 = vmul.f32 %v1002_v1, %v736_v7  ;;  %v741_v63 = vmul.f32 0.5, %v2418_v50 }
 0x1d6   : > { %v780_v10 = vmul.f32 0.044715, %v2427_v4  ;;  %v2436_v11 = vadd.f32 %v2310_v12, %v642_v48  ;;  %v644_v13 = vpop.f32.mrb[35].mxu0  ;;  %v893_v16 = vadd.f32 %v855_v3, %v2418_v50  ;;  %v930_v14 = vmul.f32 0.7978846, %v892_v43 }
 0x1d7   : > { %v1041_v18 = vmul.f32 %v1003_v9, %v737_v8 }
 0x1d8   : > { %v818_v19 = vmul.f32 %v780_v10, %v2427_v4  ;;  %v781_v20 = vmul.f32 0.044715, %v2436_v11  ;;  %v931_v21 = vmul.f32 0.7978846, %v893_v16  ;;  %1789 = vtanh.f32 %v930_v14 }
 0x1d9   : > { %v1073_v52 = vpack.c.bf16 %v1041_v18, %v1040_v17 }
 0x1da   : > { %v1786_v60 = vpop.eup %1785  ;;  %v856_v23 = vmul.f32 %v818_v19, %v2427_v4  ;;  %v819_v25 = vmul.f32 %v781_v20, %v2436_v11  ;;  %1791 = vtanh.f32 %v931_v21 }
 0x1db   : > { %v647_v28 = vpop.f32.mrb[36].mxu0  ;;  %1610 = vmatmul.mubr.bf16.gmra.mrb[20].mxu1 %v1073_v52  ;;  %v1004_v29 = vadd.f32 1.0, %v1786_v60 }
 0x1dc   : > { %v1788_v30 = vpop.eup %1787  ;;  %v857_v31 = vmul.f32 %v819_v25, %v2436_v11  ;;  %v2445_v33 = vadd.f32 %v2310_v12, %v647_v28  ;;  %v649_v34 = vpop.f32.mrb[37].mxu0  ;;  %1613 = vmatprep.mubr.msk.bf16.mxu1 %vm2002_vm0, %v2001_v27  ;;  %v894_v62 = vadd.f32 %v856_v23, %v2427_v4  ;;  %v742_v23 = vmul.f32 0.5, %v2427_v4 }
 0x1dd   : > { %v650_v6 = vpop.f32.mrb[38].mxu0  ;;  %v1005_v38 = vadd.f32 1.0, %v1788_v30  ;;  %v1042_v32 = vmul.f32 %v1004_v29, %v738_v36  ;;  %v743_v25 = vmul.f32 0.5, %v2436_v11 }
 0x1de   : > { %v782_v39 = vmul.f32 0.044715, %v2445_v33  ;;  %v2454_v40 = vadd.f32 %v2310_v12, %v650_v6  ;;  %v652_v41 = vpop.f32.mrb[39].mxu0  ;;  %v895_v44 = vadd.f32 %v857_v31, %v2436_v11  ;;  %v932_v26 = vmul.f32 0.7978846, %v894_v62 }
 0x1df   : > { %v1043_v45 = vmul.f32 %v1005_v38, %v739_v37 }
 0x1e0   : > { %v820_v46 = vmul.f32 %v782_v39, %v2445_v33  ;;  %v783_v47 = vmul.f32 0.044715, %v2454_v40  ;;  %v933_v49 = vmul.f32 0.7978846, %v895_v44  ;;  %1793 = vtanh.f32 %v932_v26 }
 0x1e1   : > { %v1074_v15 = vpack.c.bf16 %v1043_v45, %v1042_v32 }
 0x1e2   : > { %v1790_v22 = vpop.eup %1789  ;;  %v858_v51 = vmul.f32 %v820_v46, %v2445_v33  ;;  %v821_v53 = vmul.f32 %v783_v47, %v2454_v40  ;;  %1795 = vtanh.f32 %v933_v49 }
 0x1e3   : > { %v655_v54 = vpop.f32.mrb[40].mxu0  ;;  %1614 = vmatmul.mubr.bf16.gmra.mrb[24].mxu1 %v1074_v15  ;;  %v1006_v55 = vadd.f32 1.0, %v1790_v22 }
 0x1e4   : > { %v1792_v56 = vpop.eup %1791  ;;  %v859_v57 = vmul.f32 %v821_v53, %v2454_v40  ;;  %v2463_v58 = vadd.f32 %v2310_v12, %v655_v54  ;;  %v657_v59 = vpop.f32.mrb[41].mxu0  ;;  %1617 = vmatprep.mubr.msk.bf16.mxu1 %vm2002_vm0, %v2001_v27  ;;  %v896_v24 = vadd.f32 %v858_v51, %v2445_v33  ;;  %v744_v51 = vmul.f32 0.5, %v2445_v33 }
 0x1e5   : > { %v658_v35 = vpop.f32.mrb[42].mxu0  ;;  %v1007_v0 = vadd.f32 1.0, %v1792_v56  ;;  %v1044_v48 = vmul.f32 %v1006_v55, %v740_v61  ;;  %v745_v53 = vmul.f32 0.5, %v2454_v40 }
 0x1e6   : > { %v784_v1 = vmul.f32 0.044715, %v2463_v58  ;;  %v2472_v2 = vadd.f32 %v2310_v12, %v658_v35  ;;  %v660_v3 = vpop.f32.mrb[43].mxu0  ;;  %v897_v5 = vadd.f32 %v859_v57, %v2454_v40  ;;  %v934_v43 = vmul.f32 0.7978846, %v896_v24 }
 0x1e7   : > { %v1045_v7 = vmul.f32 %v1007_v0, %v741_v63 }
 0x1e8   : > { %v822_v8 = vmul.f32 %v784_v1, %v2463_v58  ;;  %v785_v9 = vmul.f32 0.044715, %v2472_v2  ;;  %v935_v10 = vmul.f32 0.7978846, %v897_v5  ;;  %1797 = vtanh.f32 %v934_v43 }
 0x1e9   : > { %v1075_v42 = vpack.c.bf16 %v1045_v7, %v1044_v48 }
 0x1ea   : > { %v1794_v50 = vpop.eup %1793  ;;  %v860_v13 = vmul.f32 %v822_v8, %v2463_v58  ;;  %v823_v16 = vmul.f32 %v785_v9, %v2472_v2  ;;  %1799 = vtanh.f32 %v935_v10 }
 0x1eb   : > { %v663_v14 = vpop.f32.mrb[44].mxu0  ;;  %1618 = vmatmul.mubr.bf16.gmra.mrb[28].mxu1 %v1075_v42  ;;  %v1008_v17 = vadd.f32 1.0, %v1794_v50 }
 0x1ec   : > { %v1796_v18 = vpop.eup %1795  ;;  %v861_v19 = vmul.f32 %v823_v16, %v2472_v2  ;;  %v2481_v20 = vadd.f32 %v2310_v12, %v663_v14  ;;  %v665_v21 = vpop.f32.mrb[45].mxu0  ;;  %1621 = vmatprep.mubr.msk.bf16.mxu1 %vm2002_vm0, %v2001_v27  ;;  %v898_v52 = vadd.f32 %v860_v13, %v2463_v58  ;;  %v746_v13 = vmul.f32 0.5, %v2463_v58 }
 0x1ed   : > { %v666_v60 = vpop.f32.mrb[46].mxu0  ;;  %v1009_v28 = vadd.f32 1.0, %v1796_v18  ;;  %v1046_v6 = vmul.f32 %v1008_v17, %v742_v23  ;;  %v747_v16 = vmul.f32 0.5, %v2472_v2 }
 0x1ee   : > { %v786_v29 = vmul.f32 0.044715, %v2481_v20  ;;  %v2490_v30 = vadd.f32 %v2310_v12, %v666_v60  ;;  %v668_v31 = vpop.f32.mrb[47].mxu0  ;;  %v899_v34 = vadd.f32 %v861_v19, %v2472_v2  ;;  %v936_v62 = vmul.f32 0.7978846, %v898_v52 }
 0x1ef   : > { %v1047_v36 = vmul.f32 %v1009_v28, %v743_v25 }
 0x1f0   : > { %v824_v37 = vmul.f32 %v786_v29, %v2481_v20  ;;  %v787_v38 = vmul.f32 0.044715, %v2490_v30  ;;  %v937_v39 = vmul.f32 0.7978846, %v899_v34  ;;  %1801 = vtanh.f32 %v936_v62 }
 0x1f1   : > { %v1076_v4 = vpack.c.bf16 %v1047_v36, %v1046_v6 }
 0x1f2   : > { %v1798_v11 = vpop.eup %1797  ;;  %v862_v41 = vmul.f32 %v824_v37, %v2481_v20  ;;  %v825_v44 = vmul.f32 %v787_v38, %v2490_v30  ;;  %1803 = vtanh.f32 %v937_v39 }
 0x1f3   : > { %v671_v26 = vpop.f32.mrb[48].mxu0  ;;  %1622 = vmatmul.mubr.bf16.gmra.mrb[32].mxu1 %v1076_v4  ;;  %v1010_v32 = vadd.f32 1.0, %v1798_v11 }
 0x1f4   : > { %v1800_v45 = vpop.eup %1799  ;;  %v863_v46 = vmul.f32 %v825_v44, %v2490_v30  ;;  %v2499_v47 = vadd.f32 %v2310_v12, %v671_v26  ;;  %v673_v49 = vpop.f32.mrb[49].mxu0  ;;  %1625 = vmatprep.mubr.msk.bf16.mxu1 %vm2002_vm0, %v2001_v27  ;;  %v900_v15 = vadd.f32 %v862_v41, %v2481_v20  ;;  %v748_v41 = vmul.f32 0.5, %v2481_v20 }
 0x1f5   : > { %v674_v22 = vpop.f32.mrb[50].mxu0  ;;  %v1011_v54 = vadd.f32 1.0, %v1800_v45  ;;  %v1048_v35 = vmul.f32 %v1010_v32, %v744_v51  ;;  %v749_v44 = vmul.f32 0.5, %v2490_v30 }
 0x1f6   : > { %v788_v55 = vmul.f32 0.044715, %v2499_v47  ;;  %v2508_v56 = vadd.f32 %v2310_v12, %v674_v22  ;;  %v676_v57 = vpop.f32.mrb[51].mxu0  ;;  %v901_v59 = vadd.f32 %v863_v46, %v2490_v30  ;;  %v938_v24 = vmul.f32 0.7978846, %v900_v15 }
 0x1f7   : > { %v1049_v61 = vmul.f32 %v1011_v54, %v745_v53 }
 0x1f8   : > { %v826_v63 = vmul.f32 %v788_v55, %v2499_v47  ;;  %v789_v0 = vmul.f32 0.044715, %v2508_v56  ;;  %v939_v1 = vmul.f32 0.7978846, %v901_v59  ;;  %1805 = vtanh.f32 %v938_v24 }
 0x1f9   : > { %v1077_v33 = vpack.c.bf16 %v1049_v61, %v1048_v35 }
 0x1fa   : > { %v1802_v40 = vpop.eup %1801  ;;  %v864_v3 = vmul.f32 %v826_v63, %v2499_v47  ;;  %v827_v5 = vmul.f32 %v789_v0, %v2508_v56  ;;  %1807 = vtanh.f32 %v939_v1 }
 0x1fb   : > { %v679_v43 = vpop.f32.mrb[52].mxu0  ;;  %1626 = vmatmul.mubr.bf16.gmra.mrb[36].mxu1 %v1077_v33  ;;  %v1012_v48 = vadd.f32 1.0, %v1802_v40 }
 0x1fc   : > { %v1804_v7 = vpop.eup %1803  ;;  %v865_v8 = vmul.f32 %v827_v5, %v2508_v56  ;;  %v2517_v9 = vadd.f32 %v2310_v12, %v679_v43  ;;  %v681_v10 = vpop.f32.mrb[53].mxu0  ;;  %1629 = vmatprep.mubr.msk.bf16.mxu1 %vm2002_vm0, %v2001_v27  ;;  %v902_v42 = vadd.f32 %v864_v3, %v2499_v47  ;;  %v750_v3 = vmul.f32 0.5, %v2499_v47 }
 0x1fd   : > { %v682_v50 = vpop.f32.mrb[54].mxu0  ;;  %v1013_v14 = vadd.f32 1.0, %v1804_v7  ;;  %v1050_v60 = vmul.f32 %v1012_v48, %v746_v13  ;;  %v751_v5 = vmul.f32 0.5, %v2508_v56 }
 0x1fe   : > { %v790_v17 = vmul.f32 0.044715, %v2517_v9  ;;  %v2526_v18 = vadd.f32 %v2310_v12, %v682_v50  ;;  %v684_v19 = vpop.f32.mrb[55].mxu0  ;;  %v903_v21 = vadd.f32 %v865_v8, %v2508_v56  ;;  %v940_v52 = vmul.f32 0.7978846, %v902_v42 }
 0x1ff   : > { %v1051_v23 = vmul.f32 %v1013_v14, %v747_v16 }
 0x200   : > { %v828_v25 = vmul.f32 %v790_v17, %v2517_v9  ;;  %v791_v28 = vmul.f32 0.044715, %v2526_v18  ;;  %v941_v29 = vmul.f32 0.7978846, %v903_v21  ;;  %1809 = vtanh.f32 %v940_v52 }
 0x201   : > { %v1078_v58 = vpack.c.bf16 %v1051_v23, %v1050_v60 }
 0x202   : > { %v1806_v2 = vpop.eup %1805  ;;  %v866_v31 = vmul.f32 %v828_v25, %v2517_v9  ;;  %v829_v34 = vmul.f32 %v791_v28, %v2526_v18  ;;  %1811 = vtanh.f32 %v941_v29 }
 0x203   : > { %v687_v62 = vpop.f32.mrb[56].mxu0  ;;  %1630 = vmatmul.mubr.bf16.gmra.mrb[40].mxu1 %v1078_v58  ;;  %v1014_v6 = vadd.f32 1.0, %v1806_v2 }
 0x204   : > { %v1808_v36 = vpop.eup %1807  ;;  %v867_v37 = vmul.f32 %v829_v34, %v2526_v18  ;;  %v2535_v38 = vadd.f32 %v2310_v12, %v687_v62  ;;  %v689_v39 = vpop.f32.mrb[57].mxu0  ;;  %1633 = vmatprep.mubr.msk.bf16.mxu1 %vm2002_vm0, %v2001_v27  ;;  %v904_v4 = vadd.f32 %v866_v31, %v2517_v9  ;;  %v752_v31 = vmul.f32 0.5, %v2517_v9 }
 0x205   : > { %v690_v11 = vpop.f32.mrb[58].mxu0  ;;  %v1015_v26 = vadd.f32 1.0, %v1808_v36  ;;  %v1052_v22 = vmul.f32 %v1014_v6, %v748_v41  ;;  %v753_v34 = vmul.f32 0.5, %v2526_v18 }
 0x206   : > { %v792_v32 = vmul.f32 0.044715, %v2535_v38  ;;  %v2544_v45 = vadd.f32 %v2310_v12, %v690_v11  ;;  %v692_v46 = vpop.f32.mrb[59].mxu0  ;;  %v905_v49 = vadd.f32 %v867_v37, %v2526_v18  ;;  %v942_v15 = vmul.f32 0.7978846, %v904_v4 }
 0x207   : > { %v1053_v51 = vmul.f32 %v1015_v26, %v749_v44 }
 0x208   : > { %v830_v53 = vmul.f32 %v792_v32, %v2535_v38  ;;  %v793_v54 = vmul.f32 0.044715, %v2544_v45  ;;  %v943_v55 = vmul.f32 0.7978846, %v905_v49  ;;  %1813 = vtanh.f32 %v942_v15 }
 0x209   : > { %v1079_v20 = vpack.c.bf16 %v1053_v51, %v1052_v22 }
 0x20a   : > { %v1810_v30 = vpop.eup %1809  ;;  %v868_v57 = vmul.f32 %v830_v53, %v2535_v38  ;;  %v831_v59 = vmul.f32 %v793_v54, %v2544_v45  ;;  %1815 = vtanh.f32 %v943_v55 }
 0x20b   : > { %v695_v24 = vpop.f32.mrb[60].mxu0  ;;  %1634 = vmatmul.mubr.bf16.gmra.mrb[44].mxu1 %v1079_v20  ;;  %v1016_v35 = vadd.f32 1.0, %v1810_v30 }
 0x20c   : > { %v1812_v61 = vpop.eup %1811  ;;  %v869_v63 = vmul.f32 %v831_v59, %v2544_v45  ;;  %v2553_v0 = vadd.f32 %v2310_v12, %v695_v24  ;;  %v697_v1 = vpop.f32.mrb[61].mxu0  ;;  %1637 = vmatprep.mubr.msk.bf16.mxu1 %vm2002_vm0, %v2001_v27  ;;  %v906_v33 = vadd.f32 %v868_v57, %v2535_v38  ;;  %v754_v57 = vmul.f32 0.5, %v2535_v38 }
 0x20d   : > { %v698_v40 = vpop.f32.mrb[62].mxu0  ;;  %v1017_v43 = vadd.f32 1.0, %v1812_v61  ;;  %v1054_v50 = vmul.f32 %v1016_v35, %v750_v3  ;;  %v755_v59 = vmul.f32 0.5, %v2544_v45 }
 0x20e   : > { %v794_v48 = vmul.f32 0.044715, %v2553_v0  ;;  %v2562_v7 = vadd.f32 %v2310_v12, %v698_v40  ;;  %v700_v8 = vpop.f32.mrb[63].mxu0  ;;  %v907_v10 = vadd.f32 %v869_v63, %v2544_v45  ;;  %v944_v42 = vmul.f32 0.7978846, %v906_v33 }
 0x20f   : > { %v1055_v13 = vmul.f32 %v1017_v43, %v751_v5 }
 0x210   : > { %v832_v16 = vmul.f32 %v794_v48, %v2553_v0  ;;  %v795_v14 = vmul.f32 0.044715, %v2562_v7  ;;  %v945_v17 = vmul.f32 0.7978846, %v907_v10  ;;  %1817 = vtanh.f32 %v944_v42 }
 0x211   : > { %v1080_v47 = vpack.c.bf16 %v1055_v13, %v1054_v50 }
 0x212   : > { %v1814_v56 = vpop.eup %1813  ;;  %v870_v19 = vmul.f32 %v832_v16, %v2553_v0  ;;  %v833_v21 = vmul.f32 %v795_v14, %v2562_v7  ;;  %1819 = vtanh.f32 %v945_v17 }
 0x213   : > { %v703_v52 = vpop.f32.mrb[64].mxu0  ;;  %1638 = vmatmul.mubr.bf16.gmra.mrb[48].mxu1 %v1080_v47  ;;  %v1018_v60 = vadd.f32 1.0, %v1814_v56 }
 0x214   : > { %v1816_v23 = vpop.eup %1815  ;;  %v871_v25 = vmul.f32 %v833_v21, %v2562_v7  ;;  %v2571_v28 = vadd.f32 %v2310_v12, %v703_v52  ;;  %v705_v29 = vpop.f32.mrb[65].mxu0  ;;  %1641 = vmatprep.mubr.msk.bf16.mxu1 %vm2002_vm0, %v2001_v27  ;;  %v908_v58 = vadd.f32 %v870_v19, %v2553_v0  ;;  %v756_v19 = vmul.f32 0.5, %v2553_v0 }
 0x215   : > { %v706_v2 = vpop.f32.mrb[66].mxu0  ;;  %v1019_v62 = vadd.f32 1.0, %v1816_v23  ;;  %v1056_v11 = vmul.f32 %v1018_v60, %v752_v31  ;;  %v757_v21 = vmul.f32 0.5, %v2562_v7 }
 0x216   : > { %v796_v6 = vmul.f32 0.044715, %v2571_v28  ;;  %v2580_v36 = vadd.f32 %v2310_v12, %v706_v2  ;;  %v708_v37 = vpop.f32.mrb[67].mxu0  ;;  %v909_v39 = vadd.f32 %v871_v25, %v2562_v7  ;;  %v946_v4 = vmul.f32 0.7978846, %v908_v58 }
 0x217   : > { %v1057_v41 = vmul.f32 %v1019_v62, %v753_v34 }
 0x218   : > { %v834_v44 = vmul.f32 %v796_v6, %v2571_v28  ;;  %v797_v26 = vmul.f32 0.044715, %v2580_v36  ;;  %v947_v32 = vmul.f32 0.7978846, %v909_v39  ;;  %1821 = vtanh.f32 %v946_v4 }
 0x219   : > { %v1081_v9 = vpack.c.bf16 %v1057_v41, %v1056_v11 }
 0x21a   : > { %v1818_v18 = vpop.eup %1817  ;;  %v872_v46 = vmul.f32 %v834_v44, %v2571_v28  ;;  %v835_v49 = vmul.f32 %v797_v26, %v2580_v36  ;;  %1823 = vtanh.f32 %v947_v32  ;;  %v758_v44 = vmul.f32 0.5, %v2571_v28 }
 0x21b   : > { %v711_v15 = vpop.f32.mrb[68].mxu0  ;;  %1642 = vmatmul.mubr.bf16.gmra.mrb[52].mxu1 %v1081_v9  ;;  %v1020_v22 = vadd.f32 1.0, %v1818_v18  ;;  %v759_v26 = vmul.f32 0.5, %v2580_v36 }
 0x21c   : > { %v1820_v51 = vpop.eup %1819  ;;  %v873_v53 = vmul.f32 %v835_v49, %v2580_v36  ;;  %v2589_v54 = vadd.f32 %v2310_v12, %v711_v15  ;;  %v713_v55 = vpop.f32.mrb[69].mxu0  ;;  %1645 = vmatprep.mubr.msk.bf16.mxu1 %vm2002_vm0, %v2001_v27  ;;  %v910_v20 = vadd.f32 %v872_v46, %v2571_v28 }
 0x21d   : > { %v714_v30 = vpop.f32.mrb[70].mxu0  ;;  %v1021_v24 = vadd.f32 1.0, %v1820_v51  ;;  %v1058_v40 = vmul.f32 %v1020_v22, %v754_v57 }
 0x21e   : > { %v798_v35 = vmul.f32 0.044715, %v2589_v54  ;;  %v2598_v61 = vadd.f32 %v2310_v12, %v714_v30  ;;  %v716_v63 = vpop.f32.mrb[71].mxu0  ;;  %v911_v1 = vadd.f32 %v873_v53, %v2580_v36  ;;  %v948_v33 = vmul.f32 0.7978846, %v910_v20 }
 0x21f   : > { %v1059_v3 = vmul.f32 %v1021_v24, %v755_v59  ;;  %v760_v28 = vmul.f32 0.5, %v2589_v54 }
 0x220   : > { %v836_v5 = vmul.f32 %v798_v35, %v2589_v54  ;;  %v799_v43 = vmul.f32 0.044715, %v2598_v61  ;;  %v949_v48 = vmul.f32 0.7978846, %v911_v1  ;;  %1825 = vtanh.f32 %v948_v33 }
 0x221   : > { %v1082_v38 = vpack.c.bf16 %v1059_v3, %v1058_v40  ;;  %v761_v36 = vmul.f32 0.5, %v2598_v61 }
 0x222   : > { %v1822_v45 = vpop.eup %1821  ;;  %v874_v8 = vmul.f32 %v836_v5, %v2589_v54  ;;  %v837_v10 = vmul.f32 %v799_v43, %v2598_v61  ;;  %1827 = vtanh.f32 %v949_v48 }
 0x223   : > { %v719_v42 = vpop.f32.mrb[72].mxu0  ;;  %1646 = vmatmul.mubr.bf16.gmra.mrb[56].mxu1 %v1082_v38  ;;  %v1022_v50 = vadd.f32 1.0, %v1822_v45 }
 0x224   : > { %v1824_v13 = vpop.eup %1823  ;;  %v875_v16 = vmul.f32 %v837_v10, %v2598_v61  ;;  %v720_v14 = vadd.f32 %v2310_v12, %v719_v42  ;;  %v721_v17 = vpop.f32.mrb[73].mxu0  ;;  %1649 = vmatprep.mubr.msk.bf16.mxu1 %vm2002_vm0, %v2001_v27  ;;  %v912_v47 = vadd.f32 %v874_v8, %v2589_v54 }
 0x225   : > { %v722_v56 = vpop.f32.mrb[74].mxu0  ;;  %v1023_v52 = vadd.f32 1.0, %v1824_v13  ;;  %v1060_v2 = vmul.f32 %v1022_v50, %v756_v19 }
 0x226   : > { %v800_v60 = vmul.f32 0.044715, %v720_v14  ;;  %v723_v23 = vadd.f32 %v2310_v12, %v722_v56  ;;  %v724_v25 = vpop.f32.mrb[75].mxu0  ;;  %v913_v29 = vadd.f32 %v875_v16, %v2598_v61  ;;  %v950_v58 = vmul.f32 0.7978846, %v912_v47 }
 0x227   : > { %v1061_v31 = vmul.f32 %v1023_v52, %v757_v21  ;;  %v762_v1 = vmul.f32 0.5, %v720_v14  ;;  %v2628_v61 = vld [vmem:[%s2775_s4] ss:$0 sm:$0xff] }
 0x228   : > { %v838_v34 = vmul.f32 %v800_v60, %v720_v14  ;;  %v801_v62 = vmul.f32 0.044715, %v723_v23  ;;  %v951_v6 = vmul.f32 0.7978846, %v913_v29  ;;  %1829 = vtanh.f32 %v950_v58 }
 0x229   : > { %v1083_v37 = vpack.c.bf16 %v1061_v31, %v1060_v2  ;;  %v763_v33 = vmul.f32 0.5, %v723_v23 }
 0x22a   : > { %v1826_v39 = vpop.eup %1825  ;;  %v876_v4 = vmul.f32 %v838_v34, %v720_v14  ;;  %v839_v0 = vmul.f32 %v801_v62, %v723_v23  ;;  %1831 = vtanh.f32 %v951_v6 }
 0x22b   : > { %1650 = vmatmul.mubr.bf16.gmra.mrb[60].mxu1 %v1083_v37  ;;  %v1024_v7 = vadd.f32 1.0, %v1826_v39 }
 0x22c   : > { %v1828_v11 = vpop.eup %1827  ;;  %v877_v41 = vmul.f32 %v839_v0, %v723_v23  ;;  %1653 = vmatprep.mubr.msk.bf16.mxu1 %vm2002_vm0, %v2001_v27  ;;  %v914_v12 = vadd.f32 %v876_v4, %v720_v14 }
 0x22d   : > { %v1025_v32 = vadd.f32 1.0, %v1828_v11  ;;  %v1062_v46 = vmul.f32 %v1024_v7, %v758_v44 }
 0x22e   : > { %v915_v9 = vadd.f32 %v877_v41, %v723_v23  ;;  %v952_v18 = vmul.f32 0.7978846, %v914_v12 }
 0x22f   : > { %v1063_v49 = vmul.f32 %v1025_v32, %v759_v26 }
 0x230   : > { %v953_v15 = vmul.f32 0.7978846, %v915_v9  ;;  %1833 = vtanh.f32 %v952_v18 }
 0x231   : > { %v1084_v22 = vpack.c.bf16 %v1063_v49, %v1062_v46 }
 0x232   : > { %v1830_v51 = vpop.eup %1829  ;;  %1835 = vtanh.f32 %v953_v15 }
 0x233   : > { %1654 = vmatmul.mubr.bf16.gmra.mrb[64].mxu1 %v1084_v22  ;;  %v1026_v53 = vadd.f32 1.0, %v1830_v51 }
 0x234   : > { %v1832_v55 = vpop.eup %1831  ;;  %1657 = vmatprep.mubr.msk.bf16.mxu1 %vm2002_vm0, %v2001_v27 }
 0x235   : > { %v1027_v20 = vadd.f32 1.0, %v1832_v55  ;;  %v1064_v30 = vmul.f32 %v1026_v53, %v760_v28 }
 0x237   : > { %v1065_v57 = vmul.f32 %v1027_v20, %v761_v36 }
 0x239   : > { %v1085_v59 = vpack.c.bf16 %v1065_v57, %v1064_v30 }
 0x23a   : > { %v1834_v24 = vpop.eup %1833 }
 0x23b   : > { %1658 = vmatmul.mubr.bf16.gmra.mrb[68].mxu1 %v1085_v59  ;;  %v1028_v35 = vadd.f32 1.0, %v1834_v24 }
 0x23c   : > { %v1836_v63 = vpop.eup %1835  ;;  %1661 = vmatprep.mubr.msk.bf16.mxu1 %vm2002_vm0, %v2001_v27 }
 0x23d   : > { %v1029_v40 = vadd.f32 1.0, %v1836_v63  ;;  %v1066_v3 = vmul.f32 %v1028_v35, %v762_v1 }
 0x23f   : > { %v1067_v5 = vmul.f32 %v1029_v40, %v763_v33 }
 0x241   : > { %v1086_v54 = vpack.c.bf16 %v1067_v5, %v1066_v3 }
 0x243   : > { %1662 = vmatmul.mubr.bf16.gmra.mrb[72].mxu1 %v1086_v54 }
 0x286   : > { %v1192_v43 = vpop.f32.mrb[0].mxu1 }
 0x287   : > { %v1193_v48 = vadd.f32 %v2628_v61, %v1192_v43  ;;  %v1591_v38 = vpop.f32.mrb[1].mxu1 }
 0x288   : > { %v1195_v45 = vpop.f32.mrb[2].mxu1 }
 0x289   : > { %1343 = vst [vmem:[%s2631_s9] sm:$0xff] %v1193_v48  ;;  %v1196_v27 = vadd.f32 %v2628_v61, %v1195_v45  ;;  %v1592_v8 = vpop.f32.mrb[3].mxu1 }
 0x28b   : > { %1344 = vst [vmem:[%s2631_s9 + $0x8] sm:$0xff] %v1196_v27 }
 0x28e   : > { %v1200_v10 = vpop.f32.mrb[4].mxu1 }
 0x28f   : > { %v1201_v42 = vadd.f32 %v2628_v61, %v1200_v10  ;;  %v1595_v50 = vpop.f32.mrb[5].mxu1 }
 0x290   : > { %v1203_v13 = vpop.f32.mrb[6].mxu1 }
 0x291   : > { %1345 = vst [vmem:[%s2631_s9 + $0x10] sm:$0xff] %v1201_v42  ;;  %v1204_v16 = vadd.f32 %v2628_v61, %v1203_v13  ;;  %v1596_v14 = vpop.f32.mrb[7].mxu1 }
 0x293   : > { %1346 = vst [vmem:[%s2631_s9 + $0x18] sm:$0xff] %v1204_v16 }
 0x296   : > { %v1208_v17 = vpop.f32.mrb[8].mxu1 }
 0x297   : > { %v1209_v47 = vadd.f32 %v2628_v61, %v1208_v17  ;;  %v1599_v56 = vpop.f32.mrb[9].mxu1 }
 0x298   : > { %v1211_v19 = vpop.f32.mrb[10].mxu1 }
 0x299   : > { %1347 = vst [vmem:[%s2631_s9 + $0x20] sm:$0xff] %v1209_v47  ;;  %v1212_v21 = vadd.f32 %v2628_v61, %v1211_v19  ;;  %v1600_v52 = vpop.f32.mrb[11].mxu1 }
 0x29b   : > { %1348 = vst [vmem:[%s2631_s9 + $0x28] sm:$0xff] %v1212_v21 }
 0x29e   : > { %v1216_v60 = vpop.f32.mrb[12].mxu1 }
 0x29f   : > { %v1217_v23 = vadd.f32 %v2628_v61, %v1216_v60  ;;  %v1603_v25 = vpop.f32.mrb[13].mxu1 }
 0x2a0   : > { %v1219_v29 = vpop.f32.mrb[14].mxu1 }
 0x2a1   : > { %1349 = vst [vmem:[%s2631_s9 + $0x30] sm:$0xff] %v1217_v23  ;;  %v1220_v58 = vadd.f32 %v2628_v61, %v1219_v29  ;;  %v1604_v2 = vpop.f32.mrb[15].mxu1 }
 0x2a3   : > { %1350 = vst [vmem:[%s2631_s9 + $0x38] sm:$0xff] %v1220_v58 }
 0x2a6   : > { %v1224_v31 = vpop.f32.mrb[16].mxu1 }
 0x2a7   : > { %v1225_v34 = vadd.f32 %v2628_v61, %v1224_v31  ;;  %v1607_v62 = vpop.f32.mrb[17].mxu1 }
 0x2a8   : > { %v1227_v6 = vpop.f32.mrb[18].mxu1 }
 0x2a9   : > { %1351 = vst [vmem:[%s2631_s9 + $0x40] sm:$0xff] %v1225_v34  ;;  %v1228_v37 = vadd.f32 %v2628_v61, %v1227_v6  ;;  %v1608_v39 = vpop.f32.mrb[19].mxu1 }
 0x2ab   : > { %1352 = vst [vmem:[%s2631_s9 + $0x48] sm:$0xff] %v1228_v37 }
 0x2ae   : > { %v1232_v4 = vpop.f32.mrb[20].mxu1 }
 0x2af   : > { %v1233_v0 = vadd.f32 %v2628_v61, %v1232_v4  ;;  %v1611_v7 = vpop.f32.mrb[21].mxu1 }
 0x2b0   : > { %v1235_v11 = vpop.f32.mrb[22].mxu1 }
 0x2b1   : > { %1353 = vst [vmem:[%s2631_s9 + $0x50] sm:$0xff] %v1233_v0  ;;  %v1236_v41 = vadd.f32 %v2628_v61, %v1235_v11  ;;  %v1612_v12 = vpop.f32.mrb[23].mxu1 }
 0x2b3   : > { %1354 = vst [vmem:[%s2631_s9 + $0x58] sm:$0xff] %v1236_v41 }
 0x2b6   : > { %v1240_v44 = vpop.f32.mrb[24].mxu1 }
 0x2b7   : > { %v1241_v26 = vadd.f32 %v2628_v61, %v1240_v44  ;;  %v1615_v32 = vpop.f32.mrb[25].mxu1 }
 0x2b8   : > { %v1243_v9 = vpop.f32.mrb[26].mxu1 }
 0x2b9   : > { %1355 = vst [vmem:[%s2631_s9 + $0x60] sm:$0xff] %v1241_v26  ;;  %v1244_v18 = vadd.f32 %v2628_v61, %v1243_v9  ;;  %v1616_v46 = vpop.f32.mrb[27].mxu1 }
 0x2bb   : > { %1356 = vst [vmem:[%s2631_s9 + $0x68] sm:$0xff] %v1244_v18 }
 0x2be   : > { %v1248_v49 = vpop.f32.mrb[28].mxu1 }
 0x2bf   : > { %v1249_v15 = vadd.f32 %v2628_v61, %v1248_v49  ;;  %v1619_v22 = vpop.f32.mrb[29].mxu1 }
 0x2c0   : > { %v1251_v51 = vpop.f32.mrb[30].mxu1 }
 0x2c1   : > { %1357 = vst [vmem:[%s2631_s9 + $0x70] sm:$0xff] %v1249_v15  ;;  %v1252_v53 = vadd.f32 %v2628_v61, %v1251_v51  ;;  %v1620_v55 = vpop.f32.mrb[31].mxu1 }
 0x2c3   : > { %1358 = vst [vmem:[%s2631_s9 + $0x78] sm:$0xff] %v1252_v53 }
 0x2c6   : > { %v1256_v28 = vpop.f32.mrb[32].mxu1 }
 0x2c7   : > { %v1257_v36 = vadd.f32 %v2628_v61, %v1256_v28  ;;  %v1623_v20 = vpop.f32.mrb[33].mxu1 }
 0x2c8   : > { %v1259_v30 = vpop.f32.mrb[34].mxu1 }
 0x2c9   : > { %1359 = vst [vmem:[%s2631_s9 + $0x80] sm:$0xff] %v1257_v36  ;;  %v1260_v57 = vadd.f32 %v2628_v61, %v1259_v30  ;;  %v1624_v59 = vpop.f32.mrb[35].mxu1 }
 0x2cb   : > { %1360 = vst [vmem:[%s2631_s9 + $0x88] sm:$0xff] %v1260_v57 }
 0x2ce   : > { %v1264_v24 = vpop.f32.mrb[36].mxu1 }
 0x2cf   : > { %v1265_v35 = vadd.f32 %v2628_v61, %v1264_v24  ;;  %v1627_v63 = vpop.f32.mrb[37].mxu1 }
 0x2d0   : > { %v1267_v1 = vpop.f32.mrb[38].mxu1 }
 0x2d1   : > { %1361 = vst [vmem:[%s2631_s9 + $0x90] sm:$0xff] %v1265_v35  ;;  %v1268_v33 = vadd.f32 %v2628_v61, %v1267_v1  ;;  %v1628_v40 = vpop.f32.mrb[39].mxu1 }
 0x2d3   : > { %1362 = vst [vmem:[%s2631_s9 + $0x98] sm:$0xff] %v1268_v33 }
 0x2d6   : > { %v1272_v3 = vpop.f32.mrb[40].mxu1 }
 0x2d7   : > { %v1273_v5 = vadd.f32 %v2628_v61, %v1272_v3  ;;  %v1631_v54 = vpop.f32.mrb[41].mxu1 }
 0x2d8   : > { %v1275_v43 = vpop.f32.mrb[42].mxu1 }
 0x2d9   : > { %1363 = vst [vmem:[%s2631_s9 + $0xa0] sm:$0xff] %v1273_v5  ;;  %v1276_v48 = vadd.f32 %v2628_v61, %v1275_v43  ;;  %v1632_v38 = vpop.f32.mrb[43].mxu1 }
 0x2db   : > { %1364 = vst [vmem:[%s2631_s9 + $0xa8] sm:$0xff] %v1276_v48 }
 0x2de   : > { %v1280_v45 = vpop.f32.mrb[44].mxu1 }
 0x2df   : > { %v1281_v27 = vadd.f32 %v2628_v61, %v1280_v45  ;;  %v1635_v8 = vpop.f32.mrb[45].mxu1 }
 0x2e0   : > { %v1283_v10 = vpop.f32.mrb[46].mxu1 }
 0x2e1   : > { %1365 = vst [vmem:[%s2631_s9 + $0xb0] sm:$0xff] %v1281_v27  ;;  %v1284_v42 = vadd.f32 %v2628_v61, %v1283_v10  ;;  %v1636_v50 = vpop.f32.mrb[47].mxu1 }
 0x2e3   : > { %1366 = vst [vmem:[%s2631_s9 + $0xb8] sm:$0xff] %v1284_v42 }
 0x2e6   : > { %v1288_v13 = vpop.f32.mrb[48].mxu1 }
 0x2e7   : > { %v1289_v16 = vadd.f32 %v2628_v61, %v1288_v13  ;;  %v1639_v14 = vpop.f32.mrb[49].mxu1 }
 0x2e8   : > { %v1291_v17 = vpop.f32.mrb[50].mxu1 }
 0x2e9   : > { %1367 = vst [vmem:[%s2631_s9 + $0xc0] sm:$0xff] %v1289_v16  ;;  %v1292_v47 = vadd.f32 %v2628_v61, %v1291_v17  ;;  %v1640_v56 = vpop.f32.mrb[51].mxu1 }
 0x2eb   : > { %1368 = vst [vmem:[%s2631_s9 + $0xc8] sm:$0xff] %v1292_v47 }
 0x2ee   : > { %v1296_v19 = vpop.f32.mrb[52].mxu1 }
 0x2ef   : > { %v1297_v21 = vadd.f32 %v2628_v61, %v1296_v19  ;;  %v1643_v52 = vpop.f32.mrb[53].mxu1 }
 0x2f0   : > { %v1299_v60 = vpop.f32.mrb[54].mxu1 }
 0x2f1   : > { %1369 = vst [vmem:[%s2631_s9 + $0xd0] sm:$0xff] %v1297_v21  ;;  %v1300_v23 = vadd.f32 %v2628_v61, %v1299_v60  ;;  %v1644_v25 = vpop.f32.mrb[55].mxu1 }
 0x2f3   : > { %1370 = vst [vmem:[%s2631_s9 + $0xd8] sm:$0xff] %v1300_v23 }
 0x2f6   : > { %v1304_v29 = vpop.f32.mrb[56].mxu1 }
 0x2f7   : > { %v1305_v58 = vadd.f32 %v2628_v61, %v1304_v29  ;;  %v1647_v2 = vpop.f32.mrb[57].mxu1 }
 0x2f8   : > { %v1307_v31 = vpop.f32.mrb[58].mxu1 }
 0x2f9   : > { %1371 = vst [vmem:[%s2631_s9 + $0xe0] sm:$0xff] %v1305_v58  ;;  %v1308_v34 = vadd.f32 %v2628_v61, %v1307_v31  ;;  %v1648_v62 = vpop.f32.mrb[59].mxu1 }
 0x2fb   : > { %1372 = vst [vmem:[%s2631_s9 + $0xe8] sm:$0xff] %v1308_v34 }
 0x2fe   : > { %v1312_v6 = vpop.f32.mrb[60].mxu1 }
 0x2ff   : > { %v1313_v37 = vadd.f32 %v2628_v61, %v1312_v6  ;;  %v1651_v39 = vpop.f32.mrb[61].mxu1 }
 0x300   : > { %v1315_v4 = vpop.f32.mrb[62].mxu1 }
 0x301   : > { %1373 = vst [vmem:[%s2631_s9 + $0xf0] sm:$0xff] %v1313_v37  ;;  %v1316_v0 = vadd.f32 %v2628_v61, %v1315_v4  ;;  %v1652_v7 = vpop.f32.mrb[63].mxu1 }
 0x303   : > { %1374 = vst [vmem:[%s2631_s9 + $0xf8] sm:$0xff] %v1316_v0 }
 0x306   : > { %v1320_v11 = vpop.f32.mrb[64].mxu1 }
 0x307   : > { %v1321_v41 = vadd.f32 %v2628_v61, %v1320_v11  ;;  %v1655_v12 = vpop.f32.mrb[65].mxu1 }
 0x308   : > { %v1323_v44 = vpop.f32.mrb[66].mxu1 }
 0x309   : > { %1375 = vst [vmem:[%s2631_s9 + $0x100] sm:$0xff] %v1321_v41  ;;  %v1324_v26 = vadd.f32 %v2628_v61, %v1323_v44  ;;  %v1656_v32 = vpop.f32.mrb[67].mxu1 }
 0x30b   : > { %1376 = vst [vmem:[%s2631_s9 + $0x108] sm:$0xff] %v1324_v26 }
 0x30e   : > { %v1328_v9 = vpop.f32.mrb[68].mxu1 }
 0x30f   : > { %v1329_v18 = vadd.f32 %v2628_v61, %v1328_v9  ;;  %v1659_v46 = vpop.f32.mrb[69].mxu1 }
 0x310   : > { %v1331_v49 = vpop.f32.mrb[70].mxu1 }
 0x311   : > { %1377 = vst [vmem:[%s2631_s9 + $0x110] sm:$0xff] %v1329_v18  ;;  %v1332_v15 = vadd.f32 %v2628_v61, %v1331_v49  ;;  %v1660_v22 = vpop.f32.mrb[71].mxu1 }
 0x313   : > { %1378 = vst [vmem:[%s2631_s9 + $0x118] sm:$0xff] %v1332_v15 }
 0x315   : > { %1388 = sbr.rel (!%p2792_p9) target bundleno = 824 (0x338), region = 56 }
 0x316   : > { %v1336_v51 = vpop.f32.mrb[72].mxu1 }
 0x317   : > { %v1337_v53 = vadd.f32 %v2628_v61, %v1336_v51  ;;  %v1663_v55 = vpop.f32.mrb[73].mxu1 }
 0x318   : > { %v1339_v28 = vpop.f32.mrb[74].mxu1 }
 0x319   : > { %1379 = vst [vmem:[%s2631_s9 + $0x120] sm:$0xff] %v1337_v53  ;;  %v1340_v36 = vadd.f32 %v2628_v61, %v1339_v28  ;;  %v1664_v20 = vpop.f32.mrb[75].mxu1 }
 0x31b   : > { %1380 = vst [vmem:[%s2631_s9 + $0x128] sm:$0xff] %v1340_v36 }
 0x31c   : > { %s2802_s11 = smov (!%p1391_p10, %s1390_s11), 38 }
 0x31d   : > { %s2712_s28 = sshll.u32 %s2802_s11, 7 }
 0x31e   : > { %s1395_s25 = ssub.s32 4864, %s2712_s28 }
 0x31f   : > { %1396 = vsyncadd %s1382_s17, %s1395_s25  ;;  %p1535_p1 = scmp.ne.s32.totalorder %s2712_s28, 0  ;;  %s1544_s30 = smul.u32 4864, %s2057_s22 }
 0x320   : > { %s1401_s26 = sshll.u32 %s2631_s9, 4  ;;  %s2003_s29 = smov [#allocation8]   ;;  %s2725_s26 = int_to_ptr.vmem [resolvable:$true] %s1401_s26 }
 0x321   : > { %s2723_s15 = scalar_lea.hbm %s2776_s5, %s1544_s30  ;;  %s1921_s16 = scalar_lea.vmem %s2725_s26, %s2712_s28 }
 0x322   : > { %p1922_p3 = scmp.ne.s32.totalorder %s2725_s26, %s1921_s16  ;;  %s1925_s7 = sshll.u32 %s2003_s29, 4  ;;  %s1926_s7 = int_to_ptr.vmem [resolvable:$false] %s1925_s7 }
 0x323   : > { %s1927_s22 = scalar_lea.vmem %s1926_s7, 9728  ;;  %p1928_p11 = scmp.lt.s32.totalorder %s2725_s26, %s1926_s7 }
 0x324   : > { %p1923_p5 = pnand %p1922_p3, %p1535_p1  ;;  %p1929_p13 = scmp.lt.s32.totalorder %s1927_s22, %s1921_s16 }
 0x326   : > { %p1924_p6 = pneg %p1923_p5  ;;  %p1930_p0 = por %p1929_p13, %p1928_p11 }
 0x328   : > { %p1931_p12 = pnand %p1930_p0, %p1924_p6 }
 0x32a   : > { %1934 = shalt.err (!%p1931_p12)
}
 0x32b   : > { %s1935_s10 = scalar_lea.hbm %s2723_s15, %s2712_s28  ;;  %s1939_s9 = scalar_lea.hbm %s2776_s5, 9600 }
 0x32c   : > { %p1936_p7 = scmp.ne.s32.totalorder %s2723_s15, %s1935_s10  ;;  %p1940_p9 = scmp.lt.u32.totalorder %s2723_s15, %s2776_s5 }
 0x32d   : > { %p1941_p10 = scmp.lt.u32.totalorder %s1939_s9, %s1935_s10  ;;  %p1943_p5 = scmp.lt.u32.totalorder %s1935_s10, %s2723_s15 }
 0x32e   : > { %p1937_p2 = pnand %p1936_p7, %p1535_p1 }
 0x32f   : > { %p1942_p3 = por %p1941_p10, %p1940_p9 }
 0x330   : > { %p1938_p8 = pneg %p1937_p2 }
 0x331   : > { %p1944_p6 = por %p1943_p5, %p1942_p3 }
 0x333   : > { %p1945_p11 = pnand %p1944_p6, %p1938_p8 }
 0x335   : > { %1948 = shalt.err (!%p1945_p11)
}
 0x336   : > { %s2004_s25 = smov 128   ;;  %s2005_s30 = smov 8  }
 0x337   : > { %1407 = dma.vmem_to_hbm [thread:$0]  (%p1535_p1), %s2725_s26, %s2712_s28, %s2723_s15, %s1382_s17, %s2004_s25, %s2004_s25, %s2005_s30  }
 0x338 PF: > { %s1416_s27 = sand.u32 1, %s1979_s18   ;;  %p2793_p13 = scmp.ne.s32.totalorder %s2784_s6, 0 }
 0x339   : > { %s1417_s14 = scalar_lea.sflag [#allocation4], %s1416_s27 }
 0x33a   : > { %p1686_p0 = pnand %p1497_p4, %p2793_p13 }
 0x33c   : > { %1974 = dma.done.wait (!%p1686_p0), %s1417_s14, 4864  }
 0x33d   : > { %1976 = vsyncadd (!%p1686_p0), %s1417_s14, 4294962432  ;;  %s2794_s16 = sld [smem:[#allocation12_spill]]  ;;  %p19_p12 = scmp.ge.s32.totalorder %s2061_s24, 4  }
 0x33e   : > { %s2795_s18 = smov %s1983_s19  ;;  %s2796_s19 = smov %s1987_s20 }
 0x33f   : > { %s2798_s21 = smov %s2061_s24  ;;  %21 = sbr.rel (!%p19_p12) target bundleno = 6 (0x6), region = 93 }
 0x343   : > { %s2797_s20 = smov %s2794_s16 }
 0x346   :  { %1422 = vsyncpa [#allocation3], 1 }
 0x347   :  { %1424 = vsyncpa [#allocation3 + $0x1], 1 }
 0x348   :  { %1425 = vsyncpa [#allocation6], 1 }
 0x349   :  { %1426 = vsyncpa [#allocation4], 1 }
 0x34a   :  { %1428 = vsyncpa [#allocation4 + $0x1], 1 }

</bundles_post_ra>
